<compile_context>
chip_gen: v7x
topology: tpu7x:2x2x1
jax: 0.10.0
libtpu: 0.0.40
codegen_flags: <defaults>
</compile_context>

<pallas_src>
import numpy as np
import jax
import jax.numpy as jnp
from jax import lax
from jax.experimental import pallas as pl
from jax.experimental.pallas import tpu as pltpu


_SQRT_2_OVER_PI = 0.7978845608028654
_GELU_C = 0.044715


def _gelu_tanh(x):
    # tanh-form GELU: the tanh lands on the otherwise-idle EUP slot.
    return 0.5 * x * (1.0 + jnp.tanh(_SQRT_2_OVER_PI * (x + _GELU_C * (x * x * x))))


# ----------------------------------------------------------------------------
# Pallas kernel wrapper.  x: (B, H, W, C) NHWC float32.
# ----------------------------------------------------------------------------
def lb_forward(x, params):
    w1, b1, dw, bdw, se1, se2, w2, b2 = params
    B, H, W, C = x.shape
    C4 = se1.shape[1]
    f32 = jnp.float32

    # ---------------- lane-dense layout selection ----------------------------
    # Pad channels up to the next divisor of 128 (padded channels stay exactly zero
    # through the whole block) so the (H*W/G, G*C) view is 128-lane dense.
    if C % 128 == 0:
        Cp, G = C, 1
    elif C < 128:
        Cp = C
        while 128 % Cp != 0:
            Cp += 1
        G = 128 // Cp
        while G > 1 and W % G != 0:      # G spatial columns share the lane axis
            G //= 2
    else:
        Cp, G = ((C + 127) // 128) * 128, 1
    padC = Cp - C
    WG = W // G                          # column-groups per image row
    R = H * WG                           # rows of the lane-dense per-image view
    GC = G * Cp                          # lane width (128 whenever possible)

    # Images per grid step: fill the MXU M dimension and amortize per-step overhead.
    # One big step for v5e/v6e; only keep a >=2-step parallel grid (v7x dual TC) when
    # that does not drop M below ~256.
    BB = min(B, max(1, -(-256 // R)))
    while B % BB:
        BB -= 1
    steps = B // BB
    if steps == 1 and BB % 2 == 0 and (BB // 2) * R >= 256:
        BB //= 2
        steps = 2
    if steps > 1 and (BB * R) % 8 != 0:  # keep (8,128) tiling legal
        BB, steps = B, 1
    N = BB * R

    # ---------------- host-side parameter packing ----------------------------
    def padc(a, axes):
        a = a.astype(f32)
        if padC == 0:
            return a
        pads = [(0, 0)] * a.ndim
        for ax in axes:
            pads[ax] = (0, padC)
        return jnp.pad(a, pads)

    w1p, w2p = padc(w1, (0, 1)), padc(w2, (0, 1))
    b1p, bdwp, b2p = padc(b1, (1,)), padc(bdw, (1,)), padc(b2, (1,))
    dwp = padc(dw, (1,))
    se1p, se2p = padc(se1, (0,)), padc(se2, (1,))

    eye_g = jnp.eye(G, dtype=f32)
    # Both 1x1 convs as block-diagonal matmuls, fused into ONE operand.
    wcat = jnp.concatenate([jnp.kron(eye_g, w1p), jnp.kron(eye_g, w2p)], axis=1)  # (GC, 2GC)
    # SE: fold 1/(H*W) mean + within-group channel fold into linear 1, and the
    # channel -> lane expansion into linear 2 (sigmoid commutes with the tiling).
    se1g = jnp.tile(se1p, (G, 1)) / float(H * W)                                  # (GC, C4)
    vecs = jnp.concatenate(                                                        # (C4+12, GC)
        [jnp.tile(se2p, (1, G)),
         jnp.tile(dwp, (1, G)),
         jnp.tile(b1p, (1, G)),
         jnp.tile(bdwp, (1, G)),
         jnp.tile(b2p, (1, G))], axis=0)

    DW0, B1R, BDWR, B2R = C4, C4 + 9, C4 + 10, C4 + 11
    sh_m = Cp % GC                  # lane roll bringing (w-1, c)
    sh_p = (GC - Cp) % GC           # lane roll bringing (w+1, c)
    wg_pow2 = (WG & (WG - 1)) == 0

    xp = x if padC == 0 else jnp.pad(x, ((0, 0), (0, 0), (0, 0), (0, padC)))
    xg = xp.reshape(B * R, GC)      # free, contiguous reshape outside the kernel

    # NOTE: bf16-casting the MXU operands (review suggestion) is intentionally left
    # out: its ~1e-3 relative error cannot be re-validated here against the 2e-3 check.

    def kernel(x_ref, w_ref, se1_ref, vecs_ref, o_ref, ybuf, csum):
        # ---- pointwise conv #1 + GELU, monolithic over the BB images (M = N) ------
        xb = x_ref[...]                                                    # (N, GC)
        y = jnp.dot(xb, w_ref[:, pl.ds(0, GC)], preferred_element_type=jnp.float32)
        ybuf[...] = _gelu_tanh(y + vecs_ref[pl.ds(B1R, 1), :])

        # ---- loop-invariant boundary masks (iotas die here) -----------------------
        rowi = lax.broadcasted_iota(jnp.int32, (R, GC), 0)
        lane = lax.broadcasted_iota(jnp.int32, (R, GC), 1)
        wg = (rowi & (WG - 1)) if wg_pow2 else (rowi % WG)   # column-group index
        m_lsame = lane >= Cp                                  # (w-1) within same row
        m_lprev = jnp.logical_and(lane < Cp, wg > 0)          # (w-1) in previous row-group
        m_rsame = lane < GC - Cp
        m_rnext = jnp.logical_and(lane >= GC - Cp, wg < WG - 1)
        m_up = rowi >= WG                                     # has an (h-1) neighbour
        m_dn = rowi < (H - 1) * WG                            # has an (h+1) neighbour

        # ---- depthwise 3x3 (pad=1) + GELU + per-image column sums, one image at a
        #      time.  Static Python loop over BB: indices are constants -> static
        #      slices; element-wise live tensors stay (R, GC) instead of BB x that. ---
        for b in range(BB):
            sl = pl.ds(b * R, R)
            yb = ybuf[sl, :]                                               # (R, GC)
            a_m = yb if sh_m == 0 else pltpu.roll(yb, shift=sh_m, axis=1)
            y_wm = jnp.where(m_lsame, a_m,
                             jnp.where(m_lprev, pltpu.roll(a_m, shift=1, axis=0), 0.0))
            a_p = yb if sh_p == 0 else pltpu.roll(yb, shift=sh_p, axis=1)
            y_wp = jnp.where(m_rsame, a_p,
                             jnp.where(m_rnext, pltpu.roll(a_p, shift=R - 1, axis=0), 0.0))

            def taps(ki):           # three horizontal taps of depthwise-kernel row ki
                return (y_wm * vecs_ref[pl.ds(DW0 + 3 * ki, 1), :]
                        + yb * vecs_ref[pl.ds(DW0 + 3 * ki + 1, 1), :]
                        + y_wp * vecs_ref[pl.ds(DW0 + 3 * ki + 2, 1), :])

            acc = taps(1)
            acc = acc + jnp.where(m_up, pltpu.roll(taps(0), shift=WG, axis=0), 0.0)
            acc = acc + jnp.where(m_dn, pltpu.roll(taps(2), shift=R - WG, axis=0), 0.0)
            y2 = _gelu_tanh(acc + vecs_ref[pl.ds(BDWR, 1), :])
            ybuf[sl, :] = y2                                               # in-place
            csum[pl.ds(b, 1), :] = jnp.sum(y2, axis=0, keepdims=True)

        # ---- squeeze-excitation, batched over the BB images of this block ---------
        s = csum[...]                                                       # (BB, GC)
        s1 = jax.nn.silu(jnp.dot(s, se1_ref[...], preferred_element_type=jnp.float32))
        gate = jax.nn.sigmoid(jnp.dot(s1, vecs_ref[pl.ds(0, C4), :],
                                      preferred_element_type=jnp.float32))  # (BB, GC)
        csum[...] = gate                                                    # reuse scratch

        # ---- apply per-image gate --------------------------------------------------
        for b in range(BB):
            sl = pl.ds(b * R, R)
            ybuf[sl, :] = ybuf[sl, :] * csum[pl.ds(b, 1), :]

        # ---- pointwise conv #2 + residual, monolithic (M = N) ----------------------
        y4 = jnp.dot(ybuf[...], w_ref[:, pl.ds(GC, GC)],
                     preferred_element_type=jnp.float32) + vecs_ref[pl.ds(B2R, 1), :]
        o_ref[...] = (y4 + x_ref[...]).astype(o_ref.dtype)

    const = lambda arr: pl.BlockSpec(arr.shape, lambda s, _n=arr.ndim: (0,) * _n)

    out = pl.pallas_call(
        kernel,
        out_shape=jax.ShapeDtypeStruct((B * R, GC), x.dtype),
        grid_spec=pltpu.PrefetchScalarGridSpec(
            num_scalar_prefetch=0,
            grid=(steps,),
            in_specs=[
                pl.BlockSpec((N, GC), lambda s: (s, 0)),   # x, lane-dense view
                const(wcat),                               # both 1x1 convs (block-diag)
                const(se1g),                               # SE linear 1 (mean folded in)
                const(vecs),                               # SE lin 2 + dw taps + biases
            ],
            out_specs=pl.BlockSpec((N, GC), lambda s: (s, 0)),
            scratch_shapes=[pltpu.VMEM((N, GC), jnp.float32),
                            pltpu.VMEM((BB, GC), jnp.float32)],
        ),
        compiler_params=pltpu.CompilerParams(dimension_semantics=("parallel",)),
    )(xg, wcat, se1g, vecs)

    out = out.reshape(B, H, W, Cp)
    return out if padC == 0 else out[..., :C]


# ----------------------------------------------------------------------------
# Pure-JAX reference (outside Pallas) for correctness.
# ----------------------------------------------------------------------------
def lb_reference(x, params):
    w1, b1, dw, bdw, se1, se2, w2, b2 = params
    B, H, W, C = x.shape
    hi = jax.lax.Precision.HIGHEST
    y = jax.nn.gelu(jnp.dot(x.reshape(B, H * W, C), w1, precision=hi) + b1,
                    approximate=False).reshape(B, H, W, C)
    yp = jnp.pad(y, ((0, 0), (1, 1), (1, 1), (0, 0)))
    acc = jnp.zeros_like(y)
    for di in range(3):
        for dj in range(3):
            acc = acc + yp[:, di:di + H, dj:dj + W, :] * dw[di * 3 + dj]
    y2 = jax.nn.gelu(acc + bdw.reshape(1, 1, 1, C), approximate=False)
    s = y2.mean(axis=(1, 2))
    s1 = jax.nn.silu(jnp.dot(s, se1, precision=hi))
    s2 = jax.nn.sigmoid(jnp.dot(s1, se2, precision=hi))
    y3 = y2 * s2[:, None, None, :]
    y4 = jnp.dot(y3.reshape(B, H * W, C), w2, precision=hi) + b2
    return y4.reshape(B, H, W, C) + x


def init_params(key, C):
    C4 = int(C * 0.25)
    ks = jax.random.split(key, 8)
    scale = 1.0 / np.sqrt(C)
    w1 = jax.random.normal(ks[0], (C, C), jnp.float32) * scale        # conv1x1 #1 (Cin, Cout)
    b1 = jax.random.normal(ks[1], (1, C), jnp.float32) * 0.01
    dw = jax.random.normal(ks[2], (9, C), jnp.float32) * (1.0 / 3.0)  # depthwise 3x3 (kh*kw, C)
    bdw = jax.random.normal(ks[3], (1, C), jnp.float32) * 0.01
    se1 = jax.random.normal(ks[4], (C, C4), jnp.float32) * scale      # Linear(C, C//4), no bias
    se2 = jax.random.normal(ks[5], (C4, C), jnp.float32) * (1.0 / np.sqrt(C4))
    w2 = jax.random.normal(ks[6], (C, C), jnp.float32) * scale        # conv1x1 #2
    b2 = jax.random.normal(ks[7], (1, C), jnp.float32) * 0.01
    return (w1, b1, dw, bdw, se1, se2, w2, b2)


if __name__ == "__main__":
    # NHWC; the equivalent PyTorch input is (2, 32, 16, 16) NCHW.
    B, H, W, C = 2, 16, 16, 32
    key = jax.random.PRNGKey(0)
    kx, kp = jax.random.split(key)
    x = jax.random.normal(kx, (B, H, W, C), jnp.float32)
    params = init_params(kp, C)

    out = jax.block_until_ready(lb_forward(x, params))
    ref = jax.block_until_ready(lb_reference(x, params))

    assert out.shape == ref.shape and out.dtype == ref.dtype
    np.testing.assert_allclose(np.asarray(out), np.asarray(ref), rtol=2e-3, atol=2e-3)

    # TODO(synk): training-mode Dropsample (stochastic depth) is not implemented; it is
    # an identity in eval / prob=0, which is what the forward pass here reproduces.
    print("KERNEL_OK")
</pallas_src>

<mosaic_0001>
module attributes {stable_mosaic.version = 11 : i64} {
  func.func @kernel(%arg0: i32, %arg1: memref<128x128xf32, #tpu.memory_space<vmem>>, %arg2: memref<128x256xf32, #tpu.memory_space<vmem>>, %arg3: memref<128x8xf32, #tpu.memory_space<vmem>>, %arg4: memref<20x128xf32, #tpu.memory_space<vmem>>, %arg5: memref<128x128xf32, #tpu.memory_space<vmem>>, %arg6: memref<128x128xf32, #tpu.memory_space<vmem>>, %arg7: memref<2x128xf32, #tpu.memory_space<vmem>>) attributes {dimension_semantics = [#tpu.dimension_semantics<parallel>], iteration_bounds = array<i64: 1>, scalar_prefetch = 0 : i64, scratch_operands = 2 : i64, tpu.core_type = #tpu.core_type<tc>, window_params = [{transform_indices = @transform_0, window_bounds = array<i64: 128, 128>}, {pipeline_mode = #tpu.pipeline_mode<synchronous>, transform_indices = @transform_1, window_bounds = array<i64: 128, 256>}, {pipeline_mode = #tpu.pipeline_mode<synchronous>, transform_indices = @transform_2, window_bounds = array<i64: 128, 8>}, {pipeline_mode = #tpu.pipeline_mode<synchronous>, transform_indices = @transform_3, window_bounds = array<i64: 20, 128>}, {transform_indices = @transform_4, window_bounds = array<i64: 128, 128>}]} {
    %c0 = arith.constant 0 : index
    %c0_0 = arith.constant 0 : index
    %0 = vector.load %arg1[%c0, %c0_0] : memref<128x128xf32, #tpu.memory_space<vmem>>, vector<128x128xf32>
    %c0_1 = arith.constant 0 : index
    %c0_2 = arith.constant 0 : index
    %1 = vector.load %arg2[%c0_1, %c0_2] : memref<128x256xf32, #tpu.memory_space<vmem>>, vector<128x128xf32>
    %cst = arith.constant dense<0.000000e+00> : vector<128x128xf32>
    %2 = tpu.matmul %0, %1, %cst {dimension_numbers = #tpu.dot_dimension_numbers<[1], [0], [0], [1], [0, 0, 1, 1], [], []>} : vector<128x128xf32>, vector<128x128xf32>, vector<128x128xf32> -> vector<128x128xf32>
    %c17 = arith.constant 17 : index
    %c0_3 = arith.constant 0 : index
    %3 = vector.load %arg4[%c17, %c0_3] : memref<20x128xf32, #tpu.memory_space<vmem>>, vector<1x128xf32>
    %4 = vector.broadcast %3 : vector<1x128xf32> to vector<128x128xf32>
    %5 = arith.addf %2, %4 : vector<128x128xf32>
    %cst_4 = arith.constant 5.000000e-01 : f32
    %6 = vector.broadcast %cst_4 : f32 to vector<128x128xf32>
    %7 = arith.mulf %6, %5 : vector<128x128xf32>
    %8 = arith.mulf %5, %5 : vector<128x128xf32>
    %9 = arith.mulf %8, %5 : vector<128x128xf32>
    %cst_5 = arith.constant 4.471500e-02 : f32
    %10 = vector.broadcast %cst_5 : f32 to vector<128x128xf32>
    %11 = arith.mulf %10, %9 : vector<128x128xf32>
    %12 = arith.addf %5, %11 : vector<128x128xf32>
    %cst_6 = arith.constant 0.797884583 : f32
    %13 = vector.broadcast %cst_6 : f32 to vector<128x128xf32>
    %14 = arith.mulf %13, %12 : vector<128x128xf32>
    %15 = math.tanh %14 : vector<128x128xf32>
    %cst_7 = arith.constant 1.000000e+00 : f32
    %16 = vector.broadcast %cst_7 : f32 to vector<128x128xf32>
    %17 = arith.addf %16, %15 : vector<128x128xf32>
    %18 = arith.mulf %7, %17 : vector<128x128xf32>
    %c0_8 = arith.constant 0 : index
    %c0_9 = arith.constant 0 : index
    %19 = vector.load %arg6[%c0_8, %c0_9] : memref<128x128xf32, #tpu.memory_space<vmem>>, vector<128x128xf32>
    tpu.vector_store %arg6[%c0_8, %c0_9], %18 {strides = array<i32>} : memref<128x128xf32, #tpu.memory_space<vmem>>, vector<128x128xf32>,
    %20 = tpu.iota {dimensions = array<i32: 0>} : vector<64x128xi32>
    %21 = tpu.iota {dimensions = array<i32: 1>} : vector<64x128xi32>
    %c3_i32 = arith.constant 3 : i32
    %22 = vector.broadcast %c3_i32 : i32 to vector<64x128xi32>
    %23 = arith.andi %20, %22 : vector<64x128xi32>
    %c32_i32 = arith.constant 32 : i32
    %24 = vector.broadcast %c32_i32 : i32 to vector<64x128xi32>
    %25 = arith.cmpi sge, %21, %24 : vector<64x128xi32>
    %c32_i32_10 = arith.constant 32 : i32
    %26 = vector.broadcast %c32_i32_10 : i32 to vector<64x128xi32>
    %27 = arith.cmpi slt, %21, %26 : vector<64x128xi32>
    %c0_i32 = arith.constant 0 : i32
    %28 = vector.broadcast %c0_i32 : i32 to vector<64x128xi32>
    %29 = arith.cmpi sgt, %23, %28 : vector<64x128xi32>
    %30 = arith.andi %27, %29 : vector<64x128xi1>
    %c96_i32 = arith.constant 96 : i32
    %31 = vector.broadcast %c96_i32 : i32 to vector<64x128xi32>
    %32 = arith.cmpi slt, %21, %31 : vector<64x128xi32>
    %c96_i32_11 = arith.constant 96 : i32
    %33 = vector.broadcast %c96_i32_11 : i32 to vector<64x128xi32>
    %34 = arith.cmpi sge, %21, %33 : vector<64x128xi32>
    %c3_i32_12 = arith.constant 3 : i32
    %35 = vector.broadcast %c3_i32_12 : i32 to vector<64x128xi32>
    %36 = arith.cmpi slt, %23, %35 : vector<64x128xi32>
    %37 = arith.andi %34, %36 : vector<64x128xi1>
    %c4_i32 = arith.constant 4 : i32
    %38 = vector.broadcast %c4_i32 : i32 to vector<64x128xi32>
    %39 = arith.cmpi sge, %20, %38 : vector<64x128xi32>
    %c60_i32 = arith.constant 60 : i32
    %40 = vector.broadcast %c60_i32 : i32 to vector<64x128xi32>
    %41 = arith.cmpi slt, %20, %40 : vector<64x128xi32>
    %c0_13 = arith.constant 0 : index
    %c0_14 = arith.constant 0 : index
    %42 = vector.load %arg6[%c0_13, %c0_14] : memref<128x128xf32, #tpu.memory_space<vmem>>, vector<64x128xf32>
    %c32_i32_15 = arith.constant 32 : i32
    %43 = tpu.dynamic_rotate %42 by %c32_i32_15 dim 1 : vector<64x128xf32>, i32 -> vector<64x128xf32>
    %c1_i32 = arith.constant 1 : i32
    %44 = tpu.dynamic_rotate %43 by %c1_i32 dim 0 : vector<64x128xf32>, i32 -> vector<64x128xf32>
    %cst_16 = arith.constant 0.000000e+00 : f32
    %45 = vector.broadcast %cst_16 : f32 to vector<64x128xf32>
    %46 = arith.select %30, %44, %45 : vector<64x128xi1>, vector<64x128xf32>
    %47 = arith.select %25, %43, %46 : vector<64x128xi1>, vector<64x128xf32>
    %c96_i32_17 = arith.constant 96 : i32
    %48 = tpu.dynamic_rotate %42 by %c96_i32_17 dim 1 : vector<64x128xf32>, i32 -> vector<64x128xf32>
    %c63_i32 = arith.constant 63 : i32
    %49 = tpu.dynamic_rotate %48 by %c63_i32 dim 0 : vector<64x128xf32>, i32 -> vector<64x128xf32>
    %cst_18 = arith.constant 0.000000e+00 : f32
    %50 = vector.broadcast %cst_18 : f32 to vector<64x128xf32>
    %51 = arith.select %37, %49, %50 : vector<64x128xi1>, vector<64x128xf32>
    %52 = arith.select %32, %48, %51 : vector<64x128xi1>, vector<64x128xf32>
    %c11 = arith.constant 11 : index
    %c0_19 = arith.constant 0 : index
    %53 = vector.load %arg4[%c11, %c0_19] : memref<20x128xf32, #tpu.memory_space<vmem>>, vector<1x128xf32>
    %54 = vector.broadcast %53 : vector<1x128xf32> to vector<64x128xf32>
    %55 = arith.mulf %47, %54 : vector<64x128xf32>
    %c12 = arith.constant 12 : index
    %c0_20 = arith.constant 0 : index
    %56 = vector.load %arg4[%c12, %c0_20] : memref<20x128xf32, #tpu.memory_space<vmem>>, vector<1x128xf32>
    %57 = vector.broadcast %56 : vector<1x128xf32> to vector<64x128xf32>
    %58 = arith.mulf %42, %57 : vector<64x128xf32>
    %59 = arith.addf %55, %58 : vector<64x128xf32>
    %c13 = arith.constant 13 : index
    %c0_21 = arith.constant 0 : index
    %60 = vector.load %arg4[%c13, %c0_21] : memref<20x128xf32, #tpu.memory_space<vmem>>, vector<1x128xf32>
    %61 = vector.broadcast %60 : vector<1x128xf32> to vector<64x128xf32>
    %62 = arith.mulf %52, %61 : vector<64x128xf32>
    %63 = arith.addf %59, %62 : vector<64x128xf32>
    %c8 = arith.constant 8 : index
    %c0_22 = arith.constant 0 : index
    %64 = vector.load %arg4[%c8, %c0_22] : memref<20x128xf32, #tpu.memory_space<vmem>>, vector<1x128xf32>
    %65 = vector.broadcast %64 : vector<1x128xf32> to vector<64x128xf32>
    %66 = arith.mulf %47, %65 : vector<64x128xf32>
    %c9 = arith.constant 9 : index
    %c0_23 = arith.constant 0 : index
    %67 = vector.load %arg4[%c9, %c0_23] : memref<20x128xf32, #tpu.memory_space<vmem>>, vector<1x128xf32>
    %68 = vector.broadcast %67 : vector<1x128xf32> to vector<64x128xf32>
    %69 = arith.mulf %42, %68 : vector<64x128xf32>
    %70 = arith.addf %66, %69 : vector<64x128xf32>
    %c10 = arith.constant 10 : index
    %c0_24 = arith.constant 0 : index
    %71 = vector.load %arg4[%c10, %c0_24] : memref<20x128xf32, #tpu.memory_space<vmem>>, vector<1x128xf32>
    %72 = vector.broadcast %71 : vector<1x128xf32> to vector<64x128xf32>
    %73 = arith.mulf %52, %72 : vector<64x128xf32>
    %74 = arith.addf %70, %73 : vector<64x128xf32>
    %c4_i32_25 = arith.constant 4 : i32
    %75 = tpu.dynamic_rotate %74 by %c4_i32_25 dim 0 : vector<64x128xf32>, i32 -> vector<64x128xf32>
    %cst_26 = arith.constant 0.000000e+00 : f32
    %76 = vector.broadcast %cst_26 : f32 to vector<64x128xf32>
    %77 = arith.select %39, %75, %76 : vector<64x128xi1>, vector<64x128xf32>
    %78 = arith.addf %63, %77 : vector<64x128xf32>
    %c14 = arith.constant 14 : index
    %c0_27 = arith.constant 0 : index
    %79 = vector.load %arg4[%c14, %c0_27] : memref<20x128xf32, #tpu.memory_space<vmem>>, vector<1x128xf32>
    %80 = vector.broadcast %79 : vector<1x128xf32> to vector<64x128xf32>
    %81 = arith.mulf %47, %80 : vector<64x128xf32>
    %c15 = arith.constant 15 : index
    %c0_28 = arith.constant 0 : index
    %82 = vector.load %arg4[%c15, %c0_28] : memref<20x128xf32, #tpu.memory_space<vmem>>, vector<1x128xf32>
    %83 = vector.broadcast %82 : vector<1x128xf32> to vector<64x128xf32>
    %84 = arith.mulf %42, %83 : vector<64x128xf32>
    %85 = arith.addf %81, %84 : vector<64x128xf32>
    %c16 = arith.constant 16 : index
    %c0_29 = arith.constant 0 : index
    %86 = vector.load %arg4[%c16, %c0_29] : memref<20x128xf32, #tpu.memory_space<vmem>>, vector<1x128xf32>
    %87 = vector.broadcast %86 : vector<1x128xf32> to vector<64x128xf32>
    %88 = arith.mulf %52, %87 : vector<64x128xf32>
    %89 = arith.addf %85, %88 : vector<64x128xf32>
    %c60_i32_30 = arith.constant 60 : i32
    %90 = tpu.dynamic_rotate %89 by %c60_i32_30 dim 0 : vector<64x128xf32>, i32 -> vector<64x128xf32>
    %cst_31 = arith.constant 0.000000e+00 : f32
    %91 = vector.broadcast %cst_31 : f32 to vector<64x128xf32>
    %92 = arith.select %41, %90, %91 : vector<64x128xi1>, vector<64x128xf32>
    %93 = arith.addf %78, %92 : vector<64x128xf32>
    %c18 = arith.constant 18 : index
    %c0_32 = arith.constant 0 : index
    %94 = vector.load %arg4[%c18, %c0_32] : memref<20x128xf32, #tpu.memory_space<vmem>>, vector<1x128xf32>
    %95 = vector.broadcast %94 : vector<1x128xf32> to vector<64x128xf32>
    %96 = arith.addf %93, %95 : vector<64x128xf32>
    %cst_33 = arith.constant 5.000000e-01 : f32
    %97 = vector.broadcast %cst_33 : f32 to vector<64x128xf32>
    %98 = arith.mulf %97, %96 : vector<64x128xf32>
    %99 = arith.mulf %96, %96 : vector<64x128xf32>
    %100 = arith.mulf %99, %96 : vector<64x128xf32>
    %cst_34 = arith.constant 4.471500e-02 : f32
    %101 = vector.broadcast %cst_34 : f32 to vector<64x128xf32>
    %102 = arith.mulf %101, %100 : vector<64x128xf32>
    %103 = arith.addf %96, %102 : vector<64x128xf32>
    %cst_35 = arith.constant 0.797884583 : f32
    %104 = vector.broadcast %cst_35 : f32 to vector<64x128xf32>
    %105 = arith.mulf %104, %103 : vector<64x128xf32>
    %106 = math.tanh %105 : vector<64x128xf32>
    %cst_36 = arith.constant 1.000000e+00 : f32
    %107 = vector.broadcast %cst_36 : f32 to vector<64x128xf32>
    %108 = arith.addf %107, %106 : vector<64x128xf32>
    %109 = arith.mulf %98, %108 : vector<64x128xf32>
    %c0_37 = arith.constant 0 : index
    %c0_38 = arith.constant 0 : index
    %110 = vector.load %arg6[%c0_37, %c0_38] : memref<128x128xf32, #tpu.memory_space<vmem>>, vector<64x128xf32>
    tpu.vector_store %arg6[%c0_37, %c0_38], %109 {strides = array<i32>} : memref<128x128xf32, #tpu.memory_space<vmem>>, vector<64x128xf32>,
    %cst_39 = arith.constant dense<0.000000e+00> : vector<128xf32>
    %111 = vector.multi_reduction <add>, %109, %cst_39 [0] : vector<64x128xf32> to vector<128xf32>
    %112 = vector.shape_cast %111 : vector<128xf32> to vector<1x128xf32>
    %c0_40 = arith.constant 0 : index
    %c0_41 = arith.constant 0 : index
    %113 = vector.load %arg7[%c0_40, %c0_41] : memref<2x128xf32, #tpu.memory_space<vmem>>, vector<1x128xf32>
    tpu.vector_store %arg7[%c0_40, %c0_41], %112 {strides = array<i32>} : memref<2x128xf32, #tpu.memory_space<vmem>>, vector<1x128xf32>,
    %c64 = arith.constant 64 : index
    %c0_42 = arith.constant 0 : index
    %114 = vector.load %arg6[%c64, %c0_42] : memref<128x128xf32, #tpu.memory_space<vmem>>, vector<64x128xf32>
    %c32_i32_43 = arith.constant 32 : i32
    %115 = tpu.dynamic_rotate %114 by %c32_i32_43 dim 1 : vector<64x128xf32>, i32 -> vector<64x128xf32>
    %c1_i32_44 = arith.constant 1 : i32
    %116 = tpu.dynamic_rotate %115 by %c1_i32_44 dim 0 : vector<64x128xf32>, i32 -> vector<64x128xf32>
    %cst_45 = arith.constant 0.000000e+00 : f32
    %117 = vector.broadcast %cst_45 : f32 to vector<64x128xf32>
    %118 = arith.select %30, %116, %117 : vector<64x128xi1>, vector<64x128xf32>
    %119 = arith.select %25, %115, %118 : vector<64x128xi1>, vector<64x128xf32>
    %c96_i32_46 = arith.constant 96 : i32
    %120 = tpu.dynamic_rotate %114 by %c96_i32_46 dim 1 : vector<64x128xf32>, i32 -> vector<64x128xf32>
    %c63_i32_47 = arith.constant 63 : i32
    %121 = tpu.dynamic_rotate %120 by %c63_i32_47 dim 0 : vector<64x128xf32>, i32 -> vector<64x128xf32>
    %cst_48 = arith.constant 0.000000e+00 : f32
    %122 = vector.broadcast %cst_48 : f32 to vector<64x128xf32>
    %123 = arith.select %37, %121, %122 : vector<64x128xi1>, vector<64x128xf32>
    %124 = arith.select %32, %120, %123 : vector<64x128xi1>, vector<64x128xf32>
    %c11_49 = arith.constant 11 : index
    %c0_50 = arith.constant 0 : index
    %125 = vector.load %arg4[%c11_49, %c0_50] : memref<20x128xf32, #tpu.memory_space<vmem>>, vector<1x128xf32>
    %126 = vector.broadcast %125 : vector<1x128xf32> to vector<64x128xf32>
    %127 = arith.mulf %119, %126 : vector<64x128xf32>
    %c12_51 = arith.constant 12 : index
    %c0_52 = arith.constant 0 : index
    %128 = vector.load %arg4[%c12_51, %c0_52] : memref<20x128xf32, #tpu.memory_space<vmem>>, vector<1x128xf32>
    %129 = vector.broadcast %128 : vector<1x128xf32> to vector<64x128xf32>
    %130 = arith.mulf %114, %129 : vector<64x128xf32>
    %131 = arith.addf %127, %130 : vector<64x128xf32>
    %c13_53 = arith.constant 13 : index
    %c0_54 = arith.constant 0 : index
    %132 = vector.load %arg4[%c13_53, %c0_54] : memref<20x128xf32, #tpu.memory_space<vmem>>, vector<1x128xf32>
    %133 = vector.broadcast %132 : vector<1x128xf32> to vector<64x128xf32>
    %134 = arith.mulf %124, %133 : vector<64x128xf32>
    %135 = arith.addf %131, %134 : vector<64x128xf32>
    %c8_55 = arith.constant 8 : index
    %c0_56 = arith.constant 0 : index
    %136 = vector.load %arg4[%c8_55, %c0_56] : memref<20x128xf32, #tpu.memory_space<vmem>>, vector<1x128xf32>
    %137 = vector.broadcast %136 : vector<1x128xf32> to vector<64x128xf32>
    %138 = arith.mulf %119, %137 : vector<64x128xf32>
    %c9_57 = arith.constant 9 : index
    %c0_58 = arith.constant 0 : index
    %139 = vector.load %arg4[%c9_57, %c0_58] : memref<20x128xf32, #tpu.memory_space<vmem>>, vector<1x128xf32>
    %140 = vector.broadcast %139 : vector<1x128xf32> to vector<64x128xf32>
    %141 = arith.mulf %114, %140 : vector<64x128xf32>
    %142 = arith.addf %138, %141 : vector<64x128xf32>
    %c10_59 = arith.constant 10 : index
    %c0_60 = arith.constant 0 : index
    %143 = vector.load %arg4[%c10_59, %c0_60] : memref<20x128xf32, #tpu.memory_space<vmem>>, vector<1x128xf32>
    %144 = vector.broadcast %143 : vector<1x128xf32> to vector<64x128xf32>
    %145 = arith.mulf %124, %144 : vector<64x128xf32>
    %146 = arith.addf %142, %145 : vector<64x128xf32>
    %c4_i32_61 = arith.constant 4 : i32
    %147 = tpu.dynamic_rotate %146 by %c4_i32_61 dim 0 : vector<64x128xf32>, i32 -> vector<64x128xf32>
    %cst_62 = arith.constant 0.000000e+00 : f32
    %148 = vector.broadcast %cst_62 : f32 to vector<64x128xf32>
    %149 = arith.select %39, %147, %148 : vector<64x128xi1>, vector<64x128xf32>
    %150 = arith.addf %135, %149 : vector<64x128xf32>
    %c14_63 = arith.constant 14 : index
    %c0_64 = arith.constant 0 : index
    %151 = vector.load %arg4[%c14_63, %c0_64] : memref<20x128xf32, #tpu.memory_space<vmem>>, vector<1x128xf32>
    %152 = vector.broadcast %151 : vector<1x128xf32> to vector<64x128xf32>
    %153 = arith.mulf %119, %152 : vector<64x128xf32>
    %c15_65 = arith.constant 15 : index
    %c0_66 = arith.constant 0 : index
    %154 = vector.load %arg4[%c15_65, %c0_66] : memref<20x128xf32, #tpu.memory_space<vmem>>, vector<1x128xf32>
    %155 = vector.broadcast %154 : vector<1x128xf32> to vector<64x128xf32>
    %156 = arith.mulf %114, %155 : vector<64x128xf32>
    %157 = arith.addf %153, %156 : vector<64x128xf32>
    %c16_67 = arith.constant 16 : index
    %c0_68 = arith.constant 0 : index
    %158 = vector.load %arg4[%c16_67, %c0_68] : memref<20x128xf32, #tpu.memory_space<vmem>>, vector<1x128xf32>
    %159 = vector.broadcast %158 : vector<1x128xf32> to vector<64x128xf32>
    %160 = arith.mulf %124, %159 : vector<64x128xf32>
    %161 = arith.addf %157, %160 : vector<64x128xf32>
    %c60_i32_69 = arith.constant 60 : i32
    %162 = tpu.dynamic_rotate %161 by %c60_i32_69 dim 0 : vector<64x128xf32>, i32 -> vector<64x128xf32>
    %cst_70 = arith.constant 0.000000e+00 : f32
    %163 = vector.broadcast %cst_70 : f32 to vector<64x128xf32>
    %164 = arith.select %41, %162, %163 : vector<64x128xi1>, vector<64x128xf32>
    %165 = arith.addf %150, %164 : vector<64x128xf32>
    %c18_71 = arith.constant 18 : index
    %c0_72 = arith.constant 0 : index
    %166 = vector.load %arg4[%c18_71, %c0_72] : memref<20x128xf32, #tpu.memory_space<vmem>>, vector<1x128xf32>
    %167 = vector.broadcast %166 : vector<1x128xf32> to vector<64x128xf32>
    %168 = arith.addf %165, %167 : vector<64x128xf32>
    %cst_73 = arith.constant 5.000000e-01 : f32
    %169 = vector.broadcast %cst_73 : f32 to vector<64x128xf32>
    %170 = arith.mulf %169, %168 : vector<64x128xf32>
    %171 = arith.mulf %168, %168 : vector<64x128xf32>
    %172 = arith.mulf %171, %168 : vector<64x128xf32>
    %cst_74 = arith.constant 4.471500e-02 : f32
    %173 = vector.broadcast %cst_74 : f32 to vector<64x128xf32>
    %174 = arith.mulf %173, %172 : vector<64x128xf32>
    %175 = arith.addf %168, %174 : vector<64x128xf32>
    %cst_75 = arith.constant 0.797884583 : f32
    %176 = vector.broadcast %cst_75 : f32 to vector<64x128xf32>
    %177 = arith.mulf %176, %175 : vector<64x128xf32>
    %178 = math.tanh %177 : vector<64x128xf32>
    %cst_76 = arith.constant 1.000000e+00 : f32
    %179 = vector.broadcast %cst_76 : f32 to vector<64x128xf32>
    %180 = arith.addf %179, %178 : vector<64x128xf32>
    %181 = arith.mulf %170, %180 : vector<64x128xf32>
    %c64_77 = arith.constant 64 : index
    %c0_78 = arith.constant 0 : index
    %182 = vector.load %arg6[%c64_77, %c0_78] : memref<128x128xf32, #tpu.memory_space<vmem>>, vector<64x128xf32>
    tpu.vector_store %arg6[%c64_77, %c0_78], %181 {strides = array<i32>} : memref<128x128xf32, #tpu.memory_space<vmem>>, vector<64x128xf32>,
    %cst_79 = arith.constant dense<0.000000e+00> : vector<128xf32>
    %183 = vector.multi_reduction <add>, %181, %cst_79 [0] : vector<64x128xf32> to vector<128xf32>
    %184 = vector.shape_cast %183 : vector<128xf32> to vector<1x128xf32>
    %c1 = arith.constant 1 : index
    %c0_80 = arith.constant 0 : index
    %185 = vector.load %arg7[%c1, %c0_80] : memref<2x128xf32, #tpu.memory_space<vmem>>, vector<1x128xf32>
    tpu.vector_store %arg7[%c1, %c0_80], %184 {strides = array<i32>} : memref<2x128xf32, #tpu.memory_space<vmem>>, vector<1x128xf32>,
    %c0_81 = arith.constant 0 : index
    %c0_82 = arith.constant 0 : index
    %186 = vector.load %arg7[%c0_81, %c0_82] : memref<2x128xf32, #tpu.memory_space<vmem>>, vector<2x128xf32>
    %c0_83 = arith.constant 0 : index
    %c0_84 = arith.constant 0 : index
    %187 = vector.load %arg3[%c0_83, %c0_84] : memref<128x8xf32, #tpu.memory_space<vmem>>, vector<128x8xf32>
    %cst_85 = arith.constant dense<0.000000e+00> : vector<2x8xf32>
    %188 = tpu.matmul %186, %187, %cst_85 {dimension_numbers = #tpu.dot_dimension_numbers<[1], [0], [0], [1], [0, 0, 1, 1], [], []>} : vector<2x128xf32>, vector<128x8xf32>, vector<2x8xf32> -> vector<2x8xf32>
    %189 = arith.negf %188 : vector<2x8xf32>
    %190 = math.exp %189 : vector<2x8xf32>
    %cst_86 = arith.constant 1.000000e+00 : f32
    %191 = vector.broadcast %cst_86 : f32 to vector<2x8xf32>
    %192 = arith.addf %191, %190 : vector<2x8xf32>
    %193 = arith.divf %191, %192 : vector<2x8xf32>
    %194 = arith.mulf %188, %193 : vector<2x8xf32>
    %c0_87 = arith.constant 0 : index
    %c0_88 = arith.constant 0 : index
    %195 = vector.load %arg4[%c0_87, %c0_88] : memref<20x128xf32, #tpu.memory_space<vmem>>, vector<8x128xf32>
    %cst_89 = arith.constant dense<0.000000e+00> : vector<2x128xf32>
    %196 = tpu.matmul %194, %195, %cst_89 {dimension_numbers = #tpu.dot_dimension_numbers<[1], [0], [0], [1], [0, 0, 1, 1], [], []>} : vector<2x8xf32>, vector<8x128xf32>, vector<2x128xf32> -> vector<2x128xf32>
    %197 = arith.negf %196 : vector<2x128xf32>
    %198 = math.exp %197 : vector<2x128xf32>
    %cst_90 = arith.constant 1.000000e+00 : f32
    %199 = vector.broadcast %cst_90 : f32 to vector<2x128xf32>
    %200 = arith.addf %199, %198 : vector<2x128xf32>
    %201 = arith.divf %199, %200 : vector<2x128xf32>
    %c0_91 = arith.constant 0 : index
    %c0_92 = arith.constant 0 : index
    %202 = vector.load %arg7[%c0_91, %c0_92] : memref<2x128xf32, #tpu.memory_space<vmem>>, vector<2x128xf32>
    tpu.vector_store %arg7[%c0_91, %c0_92], %201 {strides = array<i32>} : memref<2x128xf32, #tpu.memory_space<vmem>>, vector<2x128xf32>,
    %c0_93 = arith.constant 0 : index
    %c0_94 = arith.constant 0 : index
    %203 = vector.load %arg6[%c0_93, %c0_94] : memref<128x128xf32, #tpu.memory_space<vmem>>, vector<64x128xf32>
    %c0_95 = arith.constant 0 : index
    %c0_96 = arith.constant 0 : index
    %204 = vector.load %arg7[%c0_95, %c0_96] : memref<2x128xf32, #tpu.memory_space<vmem>>, vector<1x128xf32>
    %205 = vector.broadcast %204 : vector<1x128xf32> to vector<64x128xf32>
    %206 = arith.mulf %203, %205 : vector<64x128xf32>
    %c0_97 = arith.constant 0 : index
    %c0_98 = arith.constant 0 : index
    %207 = vector.load %arg6[%c0_97, %c0_98] : memref<128x128xf32, #tpu.memory_space<vmem>>, vector<64x128xf32>
    tpu.vector_store %arg6[%c0_97, %c0_98], %206 {strides = array<i32>} : memref<128x128xf32, #tpu.memory_space<vmem>>, vector<64x128xf32>,
    %c64_99 = arith.constant 64 : index
    %c0_100 = arith.constant 0 : index
    %208 = vector.load %arg6[%c64_99, %c0_100] : memref<128x128xf32, #tpu.memory_space<vmem>>, vector<64x128xf32>
    %c1_101 = arith.constant 1 : index
    %c0_102 = arith.constant 0 : index
    %209 = vector.load %arg7[%c1_101, %c0_102] : memref<2x128xf32, #tpu.memory_space<vmem>>, vector<1x128xf32>
    %210 = vector.broadcast %209 : vector<1x128xf32> to vector<64x128xf32>
    %211 = arith.mulf %208, %210 : vector<64x128xf32>
    %c64_103 = arith.constant 64 : index
    %c0_104 = arith.constant 0 : index
    %212 = vector.load %arg6[%c64_103, %c0_104] : memref<128x128xf32, #tpu.memory_space<vmem>>, vector<64x128xf32>
    tpu.vector_store %arg6[%c64_103, %c0_104], %211 {strides = array<i32>} : memref<128x128xf32, #tpu.memory_space<vmem>>, vector<64x128xf32>,
    %c0_105 = arith.constant 0 : index
    %c0_106 = arith.constant 0 : index
    %213 = vector.load %arg6[%c0_105, %c0_106] : memref<128x128xf32, #tpu.memory_space<vmem>>, vector<128x128xf32>
    %c0_107 = arith.constant 0 : index
    %c128 = arith.constant 128 : index
    %214 = vector.load %arg2[%c0_107, %c128] : memref<128x256xf32, #tpu.memory_space<vmem>>, vector<128x128xf32>
    %cst_108 = arith.constant dense<0.000000e+00> : vector<128x128xf32>
    %215 = tpu.matmul %213, %214, %cst_108 {dimension_numbers = #tpu.dot_dimension_numbers<[1], [0], [0], [1], [0, 0, 1, 1], [], []>} : vector<128x128xf32>, vector<128x128xf32>, vector<128x128xf32> -> vector<128x128xf32>
    %c19 = arith.constant 19 : index
    %c0_109 = arith.constant 0 : index
    %216 = vector.load %arg4[%c19, %c0_109] : memref<20x128xf32, #tpu.memory_space<vmem>>, vector<1x128xf32>
    %217 = vector.broadcast %216 : vector<1x128xf32> to vector<128x128xf32>
    %218 = arith.addf %215, %217 : vector<128x128xf32>
    %c0_110 = arith.constant 0 : index
    %c0_111 = arith.constant 0 : index
    %219 = vector.load %arg1[%c0_110, %c0_111] : memref<128x128xf32, #tpu.memory_space<vmem>>, vector<128x128xf32>
    %220 = arith.addf %218, %219 : vector<128x128xf32>
    %c0_112 = arith.constant 0 : index
    %c0_113 = arith.constant 0 : index
    %221 = vector.load %arg5[%c0_112, %c0_113] : memref<128x128xf32, #tpu.memory_space<vmem>>, vector<128x128xf32>
    tpu.vector_store %arg5[%c0_112, %c0_113], %220 {strides = array<i32>} : memref<128x128xf32, #tpu.memory_space<vmem>>, vector<128x128xf32>,
    return
  }
  func.func @transform_0(%arg0: i32) -> (i32, i32) {
    %c0_i32 = arith.constant 0 : i32
    %c0_i32_0 = arith.constant 0 : i32
    return %arg0, %c0_i32 : i32, i32
  }
  func.func @transform_1(%arg0: i32) -> (i32, i32) {
    %c0_i32 = arith.constant 0 : i32
    %c0_i32_0 = arith.constant 0 : i32
    %c0_i32_1 = arith.constant 0 : i32
    return %c0_i32, %c0_i32_0 : i32, i32
  }
  func.func @transform_2(%arg0: i32) -> (i32, i32) {
    %c0_i32 = arith.constant 0 : i32
    %c0_i32_0 = arith.constant 0 : i32
    %c0_i32_1 = arith.constant 0 : i32
    return %c0_i32, %c0_i32_0 : i32, i32
  }
  func.func @transform_3(%arg0: i32) -> (i32, i32) {
    %c0_i32 = arith.constant 0 : i32
    %c0_i32_0 = arith.constant 0 : i32
    %c0_i32_1 = arith.constant 0 : i32
    return %c0_i32, %c0_i32_0 : i32, i32
  }
  func.func @transform_4(%arg0: i32) -> (i32, i32) {
    %c0_i32 = arith.constant 0 : i32
    %c0_i32_0 = arith.constant 0 : i32
    return %arg0, %c0_i32 : i32, i32
  }
}

</mosaic_0001>

<bundles_post_ra>
// kernel: tpu_custom_call.1
= control target key start
LH: loop header
LB: loop body
LE: loop exit
PB: predicated region body
PF: predicated region fallthrough
CT: control target
= control target key end

     0   :  { %9 = vsyncpa [#allocation5], 0  ;;  %s4279_s0 = inlined_call_operand.vmem [shape: f32[128,128], index: 0, kind: input, shape index: {}]   ;;  %s4280_s1 = inlined_call_operand.hbm [shape: f32[128,256], index: 1, kind: input, shape index: {}]   ;;  %s4281_s2 = inlined_call_operand.vmem [shape: f32[128,8], index: 2, kind: input, shape index: {}]   ;;  %s4282_s3 = inlined_call_operand.hbm [shape: f32[20,128], index: 3, kind: input, shape index: {}]   ;;  %s4283_s4 = inlined_call_operand.hbm [shape: f32[128,128], index: 4, kind: output, shape index: {}]  }
   0x1   :  { %10 = vsyncpa [#allocation8], 0 }
   0x2   :  { %11 = vsyncpa [#allocation6], 0  ;;  %s2334_s15 = smov [#allocation4]   ;;  %s2262_s19 = scalar_lea.hbm %s4280_s1, 4096 }
   0x3   :  { %s19_s16 = sshll.u32 %s2334_s15, 4  ;;  %p2263_p0 = scmp.ne.s32.totalorder %s4280_s1, %s2262_s19  ;;  %s20_s16 = int_to_ptr.vmem [resolvable:$true] %s19_s16 }
   0x4   :  { %p2266_p1 = scmp.lt.u32.totalorder %s2262_s19, %s4280_s1 }
   0x6   :  { %p2268_p2 = pnand %p2266_p1, %p2263_p0 }
   0x8   :  { %2271 = shalt.err (!%p2268_p2)
}
   0x9   :  { %s2272_s24 = scalar_lea.vmem %s20_s16, 4096  ;;  %p2277_p4 = scmp.lt.s32.totalorder %s20_s16, %s20_s16 }
   0xa   :  { %p2273_p3 = scmp.ne.s32.totalorder %s20_s16, %s2272_s24  ;;  %p2278_p5 = scmp.lt.s32.totalorder %s2272_s24, %s2272_s24 }
   0xc   :  { %p2279_p6 = por %p2278_p5, %p2277_p4 }
   0xe   :  { %p2280_p7 = pnand %p2279_p6, %p2273_p3 }
  0x10   :  { %2283 = shalt.err (!%p2280_p7)
}
  0x11   :  { %s2335_s25 = smov 256   ;;  %s2336_s26 = smov 16  }
  0x12   :  { %25 = dma.hbm_to_vmem [thread:$0]  %s4280_s1, 4096, %s20_s16, [#allocation5], %s2335_s25, %s2335_s25, %s2336_s26  }
  0x13   :  { %s2337_s29 = smov [#allocation7]   ;;  %s2284_s7 = scalar_lea.hbm %s4282_s3, 384 }
  0x14   :  { %s33_s30 = sshll.u32 %s2337_s29, 4  ;;  %p2285_p8 = scmp.ne.s32.totalorder %s4282_s3, %s2284_s7  ;;  %s34_s30 = int_to_ptr.vmem [resolvable:$true] %s33_s30 }
  0x15   :  { %p2288_p9 = scmp.lt.u32.totalorder %s2284_s7, %s4282_s3 }
  0x17   :  { %p2290_p10 = pnand %p2288_p9, %p2285_p8 }
  0x19   :  { %2293 = shalt.err (!%p2290_p10)
}
  0x1a   :  { %s2294_s12 = scalar_lea.vmem %s34_s30, 384  ;;  %p2299_p12 = scmp.lt.s32.totalorder %s34_s30, %s34_s30 }
  0x1b   :  { %p2295_p11 = scmp.ne.s32.totalorder %s34_s30, %s2294_s12  ;;  %p2300_p13 = scmp.lt.s32.totalorder %s2294_s12, %s2294_s12 }
  0x1d   :  { %p2301_p0 = por %p2300_p13, %p2299_p12 }
  0x1f   :  { %p2302_p1 = pnand %p2301_p0, %p2295_p11 }
  0x21   :  { %2305 = shalt.err (!%p2302_p1)
}
  0x22   :  { %s2338_s1 = smov 128   ;;  %s2339_s13 = smov 8  }
  0x23   :  { %39 = dma.hbm_to_vmem [thread:$0]  %s4282_s3, 384, %s34_s30, [#allocation8], %s2338_s1, %s2338_s1, %s2339_s13  }
  0x24   :  { %2328 = dma.done.wait [#allocation5], 4096  }
  0x25   :  { %2329 = vsyncadd [#allocation5], 4294963200 }
  0x26   :  { %2330 = dma.done.wait [#allocation8], 384  }
  0x27   :  { %2331 = vsyncadd [#allocation8], 4294966912  ;;  %v62_v0 = vld [vmem:[#allocation4] sm:$0xff]  ;;  %v63_v1 = vld [vmem:[#allocation4 + $0x10] sm:$0xff]  ;;  %s2340_s21 = smov 96   ;;  %s2341_s22 = smov 32  }
  0x28   :  { %v64_v2 = vld [vmem:[#allocation4 + $0x20] sm:$0xff]  ;;  %v2086_v3 = vpack.c.bf16 %v63_v1, %v62_v0  ;;  %v65_v4 = vld [vmem:[#allocation4 + $0x30] sm:$0xff]  ;;  %s2345_s7 = smov [#allocation9]  }
  0x29   :  { %v2090_v5 = vpack.c.bf16 %v65_v4, %v64_v2  ;;  %v66_v6 = vld [vmem:[#allocation4 + $0x40] sm:$0xff]  ;;  %v67_v7 = vld [vmem:[#allocation4 + $0x50] sm:$0xff]  ;;  %s1811_s8 = sshll.u32 %s2345_s7, 4  ;;  %s1812_s8 = int_to_ptr.vmem [resolvable:$true] %s1811_s8 }
  0x2a   :  { %2087 = vmatprep.subr.bf16.mxu1 %v2086_v3  ;;  %v2094_v8 = vpack.c.bf16 %v67_v7, %v66_v6  ;;  %v46_v9 = vld [vmem:[%s4279_s0] sm:$0xff]  ;;  %v69_v11 = vld [vmem:[#allocation4 + $0x70] sm:$0xff]  ;;  %v47_v25 = vld [vmem:[%s4279_s0 + $0x8] sm:$0xff]  ;;  %s2306_s9 = scalar_lea.vmem %s1812_s8, 2048  ;;  %p2311_p3 = scmp.lt.s32.totalorder %s1812_s8, %s1812_s8 }
  0x2b   :  { %2089 = vmatpush3.bf16.msra.mxu1 %v2086_v3  ;;  %v68_v10 = vld [vmem:[#allocation4 + $0x60] sm:$0xff]  ;;  %1966 = vmatprep.mubr.f32.mxu1 %v46_v9  ;;  %v71_v14 = vld [vmem:[#allocation4 + $0x90] sm:$0xff]  ;;  %p2307_p2 = scmp.ne.s32.totalorder %s1812_s8, %s2306_s9  ;;  %p2312_p4 = scmp.lt.s32.totalorder %s2306_s9, %s2306_s9 }
  0x2c   :  { %2091 = vmatprep.subr.bf16.mxu1 %v2090_v5  ;;  %v2098_v12 = vpack.c.bf16 %v69_v11, %v68_v10  ;;  %v70_v13 = vld [vmem:[#allocation4 + $0x80] sm:$0xff]  ;;  %v73_v17 = vld [vmem:[#allocation4 + $0xb0] sm:$0xff] }
  0x2d   :  { %v2102_v15 = vpack.c.bf16 %v71_v14, %v70_v13  ;;  %v72_v16 = vld [vmem:[#allocation4 + $0xa0] sm:$0xff]  ;;  %v75_v20 = vld [vmem:[#allocation4 + $0xd0] sm:$0xff]  ;;  %p2313_p5 = por %p2312_p4, %p2311_p3 }
  0x2e   :  { %v2106_v18 = vpack.c.bf16 %v73_v17, %v72_v16  ;;  %v74_v19 = vld [vmem:[#allocation4 + $0xc0] sm:$0xff]  ;;  %v77_v23 = vld [vmem:[#allocation4 + $0xf0] sm:$0xff] }
  0x2f   :  { %2093 = vmatpush3.bf16.msra.mxu1 %v2090_v5  ;;  %v2110_v21 = vpack.c.bf16 %v75_v20, %v74_v19  ;;  %v76_v22 = vld [vmem:[#allocation4 + $0xe0] sm:$0xff]  ;;  %v48_v26 = vld [vmem:[%s4279_s0 + $0x10] sm:$0xff]  ;;  %v49_v27 = vld [vmem:[%s4279_s0 + $0x18] sm:$0xff]  ;;  %p2314_p6 = pnand %p2313_p5, %p2307_p2 }
  0x30   :  { %2095 = vmatprep.subr.bf16.mxu1 %v2094_v8  ;;  %v2114_v24 = vpack.c.bf16 %v77_v23, %v76_v22  ;;  %v50_v28 = vld [vmem:[%s4279_s0 + $0x20] sm:$0xff]  ;;  %v51_v29 = vld [vmem:[%s4279_s0 + $0x28] sm:$0xff]  ;;  %v52_v30 = vld [vmem:[%s4279_s0 + $0x30] sm:$0xff] }
  0x31   :  { %v53_v31 = vld [vmem:[%s4279_s0 + $0x38] sm:$0xff]  ;;  %v54_v32 = vld [vmem:[%s4279_s0 + $0x40] sm:$0xff]  ;;  %v55_v33 = vld [vmem:[%s4279_s0 + $0x48] sm:$0xff] }
  0x32   :  { %v56_v34 = vld [vmem:[%s4279_s0 + $0x50] sm:$0xff]  ;;  %v57_v35 = vld [vmem:[%s4279_s0 + $0x58] sm:$0xff]  ;;  %v58_v36 = vld [vmem:[%s4279_s0 + $0x60] sm:$0xff] }
  0x33   :  { %2097 = vmatpush3.bf16.msra.mxu1 %v2094_v8  ;;  %v59_v37 = vld [vmem:[%s4279_s0 + $0x68] sm:$0xff]  ;;  %v60_v38 = vld [vmem:[%s4279_s0 + $0x70] sm:$0xff]  ;;  %v61_v39 = vld [vmem:[%s4279_s0 + $0x78] sm:$0xff] }
  0x34   :  { %2099 = vmatprep.subr.bf16.mxu1 %v2098_v12  ;;  %v2446_v40 = vld [vmem:[#allocation7 + $0x11] ss:$0 sm:$0xff] }
  0x37   :  { %2101 = vmatpush3.bf16.msra.mxu1 %v2098_v12 }
  0x38   :  { %2103 = vmatprep.subr.bf16.mxu1 %v2102_v15 }
  0x3b   :  { %2105 = vmatpush3.bf16.msra.mxu1 %v2102_v15 }
  0x3c   :  { %2107 = vmatprep.subr.bf16.mxu1 %v2106_v18 }
  0x3f   :  { %2109 = vmatpush3.bf16.msra.mxu1 %v2106_v18 }
  0x40   :  { %2111 = vmatprep.subr.bf16.mxu1 %v2110_v21 }
  0x43   :  { %2113 = vmatpush3.bf16.msra.mxu1 %v2110_v21 }
  0x44   :  { %2115 = vmatprep.subr.bf16.mxu1 %v2114_v24 }
  0x47   :  { %2117 = vmatpush3.bf16.msra.mxu1 %v2114_v24 }
  0x4a   :  { %1967 = vmatmul.mubr.f32.vlgmr.msra.gmra.mrb[0].mxu1 %v47_v25 }
  0x4b   :  { %1969 = vmatprep.mubr.f32.mxu1 %v48_v26 }
  0x4e   :  { %1970 = vmatmul.mubr.f32.gmra.mrb[2].mxu1 %v49_v27 }
  0x4f   :  { %1972 = vmatprep.mubr.f32.mxu1 %v50_v28 }
  0x52   :  { %1973 = vmatmul.mubr.f32.gmra.mrb[4].mxu1 %v51_v29 }
  0x53   :  { %1975 = vmatprep.mubr.f32.mxu1 %v52_v30 }
  0x56   :  { %1976 = vmatmul.mubr.f32.gmra.mrb[6].mxu1 %v53_v31 }
  0x57   :  { %1978 = vmatprep.mubr.f32.mxu1 %v54_v32 }
  0x5a   :  { %1979 = vmatmul.mubr.f32.gmra.mrb[8].mxu1 %v55_v33 }
  0x5b   :  { %1981 = vmatprep.mubr.f32.mxu1 %v56_v34 }
  0x5e   :  { %1982 = vmatmul.mubr.f32.gmra.mrb[10].mxu1 %v57_v35 }
  0x5f   :  { %1984 = vmatprep.mubr.f32.mxu1 %v58_v36 }
  0x62   :  { %1985 = vmatmul.mubr.f32.gmra.mrb[12].mxu1 %v59_v37 }
  0x63   :  { %1987 = vmatprep.mubr.f32.mxu1 %v60_v38 }
  0x66   :  { %1988 = vmatmul.mubr.f32.gmra.mrb[14].mxu1 %v61_v39 }
 0x11d   :  { %v1968_v41 = vpop.f32.mrb[0].mxu1 }
 0x11e   :  { %v2449_v42 = vadd.f32 %v1968_v41, %v2446_v40  ;;  %v149_v43 = vpop.f32.mrb[1].mxu1 }
 0x11f   :  { %v2452_v44 = vadd.f32 %v2446_v40, %v149_v43 }
 0x120   :  { %v245_v45 = vmul.f32 %v2449_v42, %v2449_v42  ;;  %v229_v41 = vmul.f32 0.5, %v2449_v42 }
 0x121   :  { %v244_v46 = vmul.f32 %v2452_v44, %v2452_v44  ;;  %v1971_v47 = vpop.f32.mrb[2].mxu1 }
 0x122   :  { %v261_v48 = vmul.f32 %v245_v45, %v2449_v42  ;;  %v2460_v49 = vadd.f32 %v1971_v47, %v2446_v40  ;;  %v159_v50 = vpop.f32.mrb[3].mxu1 }
 0x123   :  { %v260_v51 = vmul.f32 %v244_v46, %v2452_v44  ;;  %v2464_v52 = vadd.f32 %v2446_v40, %v159_v50 }
 0x124   :  { %v277_v53 = vmul.f32 0.044715, %v261_v48  ;;  %v247_v54 = vmul.f32 %v2460_v49, %v2460_v49 }
 0x125   :  { %v276_v55 = vmul.f32 0.044715, %v260_v51  ;;  %v246_v56 = vmul.f32 %v2464_v52, %v2464_v52  ;;  %v2470_v57 = vpop.f32.mrb[4].mxu1 }
 0x126   :  { %v293_v58 = vadd.f32 %v277_v53, %v2449_v42  ;;  %v263_v59 = vmul.f32 %v247_v54, %v2460_v49  ;;  %v169_v60 = vpop.f32.mrb[5].mxu1  ;;  %v228_v42 = vmul.f32 0.5, %v2452_v44 }
 0x127   :  { %v292_v61 = vadd.f32 %v276_v55, %v2452_v44  ;;  %v262_v62 = vmul.f32 %v246_v56, %v2464_v52  ;;  %v2477_v63 = vadd.f32 %v2446_v40, %v169_v60 }
 0x128   :  { %v309_v0 = vmul.f32 0.7978846, %v293_v58  ;;  %v279_v1 = vmul.f32 0.044715, %v263_v59  ;;  %v231_v59 = vmul.f32 0.5, %v2460_v49 }
 0x129   :  { %v308_v2 = vmul.f32 0.7978846, %v292_v61  ;;  %v278_v3 = vmul.f32 0.044715, %v262_v62  ;;  %v248_v4 = vmul.f32 %v2477_v63, %v2477_v63  ;;  %v1977_v5 = vpop.f32.mrb[6].mxu1 }
 0x12a   :  { %2186 = vtanh.f32 %v309_v0  ;;  %v295_v6 = vadd.f32 %v279_v1, %v2460_v49  ;;  %v2483_v7 = vadd.f32 %v1977_v5, %v2446_v40  ;;  %v179_v8 = vpop.f32.mrb[7].mxu1 }
 0x12b   :  { %2188 = vtanh.f32 %v308_v2  ;;  %v294_v9 = vadd.f32 %v278_v3, %v2464_v52  ;;  %v264_v10 = vmul.f32 %v248_v4, %v2477_v63  ;;  %v2488_v11 = vadd.f32 %v2446_v40, %v179_v8 }
 0x12c   :  { %v311_v12 = vmul.f32 0.7978846, %v295_v6  ;;  %v251_v13 = vmul.f32 %v2483_v7, %v2483_v7 }
 0x12d   :  { %v310_v14 = vmul.f32 0.7978846, %v294_v9  ;;  %v280_v15 = vmul.f32 0.044715, %v264_v10  ;;  %v250_v16 = vmul.f32 %v2488_v11, %v2488_v11  ;;  %v1980_v17 = vpop.f32.mrb[8].mxu1 }
 0x12e   :  { %2190 = vtanh.f32 %v311_v12  ;;  %v267_v18 = vmul.f32 %v251_v13, %v2483_v7  ;;  %v2496_v19 = vadd.f32 %v1980_v17, %v2446_v40  ;;  %v189_v20 = vpop.f32.mrb[9].mxu1  ;;  %v230_v12 = vmul.f32 0.5, %v2464_v52 }
 0x12f   :  { %2192 = vtanh.f32 %v310_v14  ;;  %v296_v21 = vadd.f32 %v280_v15, %v2477_v63  ;;  %v2500_v22 = vadd.f32 %v2446_v40, %v189_v20  ;;  %v266_v26 = vmul.f32 %v250_v16, %v2488_v11 }
 0x130   :  { %v283_v23 = vmul.f32 0.044715, %v267_v18  ;;  %v253_v24 = vmul.f32 %v2496_v19, %v2496_v19 }
 0x131   :  { %v312_v25 = vmul.f32 0.7978846, %v296_v21  ;;  %v252_v27 = vmul.f32 %v2500_v22, %v2500_v22  ;;  %v1983_v28 = vpop.f32.mrb[10].mxu1  ;;  %v282_v45 = vmul.f32 0.044715, %v266_v26 }
 0x132   :  { %v299_v29 = vadd.f32 %v283_v23, %v2483_v7  ;;  %v269_v30 = vmul.f32 %v253_v24, %v2496_v19  ;;  %v2510_v31 = vadd.f32 %v1983_v28, %v2446_v40  ;;  %v199_v32 = vpop.f32.mrb[11].mxu1  ;;  %v2562_v24 = vadd.f32 %v2470_v57, %v2446_v40 }
 0x133   :  { %2194 = vtanh.f32 %v312_v25  ;;  %v268_v33 = vmul.f32 %v252_v27, %v2500_v22  ;;  %v2514_v34 = vadd.f32 %v2446_v40, %v199_v32  ;;  %v298_v0 = vadd.f32 %v282_v45, %v2488_v11 }
 0x134   :  { %v2187_v35 = vpop.eup %2186  ;;  %v315_v36 = vmul.f32 0.7978846, %v299_v29  ;;  %v285_v37 = vmul.f32 0.044715, %v269_v30  ;;  %v255_v38 = vmul.f32 %v2510_v31, %v2510_v31  ;;  %v232_v25 = vmul.f32 0.5, %v2477_v63 }
 0x135   :  { %v2189_v39 = vpop.eup %2188  ;;  %v341_v43 = vadd.f32 1.0, %v2187_v35  ;;  %v284_v46 = vmul.f32 0.044715, %v268_v33  ;;  %v1986_v50 = vpop.f32.mrb[12].mxu1  ;;  %v254_v55 = vmul.f32 %v2514_v34, %v2514_v34  ;;  %v314_v13 = vmul.f32 0.7978846, %v298_v0 }
 0x136   :  { %2196 = vtanh.f32 %v315_v36  ;;  %v301_v47 = vadd.f32 %v285_v37, %v2496_v19  ;;  %v271_v48 = vmul.f32 %v255_v38, %v2510_v31  ;;  %v340_v53 = vadd.f32 1.0, %v2189_v39  ;;  %v209_v56 = vpop.f32.mrb[13].mxu1 }
 0x137   :  { %v2521_v51 = vmul.f32 %v341_v43, %v229_v41  ;;  %v300_v54 = vadd.f32 %v284_v46, %v2500_v22  ;;  %v2530_v2 = vadd.f32 %v2446_v40, %v209_v56  ;;  %v270_v3 = vmul.f32 %v254_v55, %v2514_v34 }
 0x138   :  { %v2191_v58 = vpop.eup %2190  ;;  %v317_v60 = vmul.f32 0.7978846, %v301_v47  ;;  %v287_v1 = vmul.f32 0.044715, %v271_v48  ;;  %v2537_v5 = vmul.f32 %v340_v53, %v228_v42  ;;  %v249_v33 = vmul.f32 %v2562_v24, %v2562_v24 }
 0x139   :  { %v2193_v61 = vpop.eup %2192  ;;  %v343_v62 = vadd.f32 1.0, %v2191_v58  ;;  %518 = vrot.lane.b32.xlu1 %v2521_v51, %s2340_s21  ;;  %469 = vrot.lane.b32.xlu0 %v2521_v51, %s2341_s22  ;;  %v1989_v44 = vpop.f32.mrb[14].mxu1  ;;  %v316_v49 = vmul.f32 0.7978846, %v300_v54  ;;  %v256_v9 = vmul.f32 %v2530_v2, %v2530_v2  ;;  %v286_v16 = vmul.f32 0.044715, %v270_v3 }
 0x13a   :  { %2198 = vtanh.f32 %v317_v60  ;;  %v219_v4 = vpop.f32.mrb[15].mxu1  ;;  %v342_v8 = vadd.f32 1.0, %v2193_v61  ;;  %v303_v14 = vadd.f32 %v287_v1, %v2510_v31  ;;  %v2546_v15 = vadd.f32 %v1989_v44, %v2446_v40 }
 0x13b   :  { %v2539_v6 = vmul.f32 %v343_v62, %v231_v59  ;;  %2200 = vtanh.f32 %v316_v49  ;;  %v272_v17 = vmul.f32 %v256_v9, %v2530_v2  ;;  %v2554_v18 = vadd.f32 %v2446_v40, %v219_v4 }
 0x13c   :  { %v2556_v52 = vmul.f32 %v342_v8, %v230_v12  ;;  %v259_v23 = vmul.f32 %v2546_v15, %v2546_v15  ;;  %2202 = vtanh.f32 %v314_v13  ;;  %v319_v26 = vmul.f32 0.7978846, %v303_v14 }
 0x13d   :  { %v2195_v10 = vpop.eup %2194  ;;  %522 = vrot.lane.b32.xlu1 %v2539_v6, %s2340_s21  ;;  %467 = vrot.lane.b32.xlu0 %v2537_v5, %s2341_s22  ;;  %v302_v27 = vadd.f32 %v286_v16, %v2514_v34  ;;  %v288_v28 = vmul.f32 0.044715, %v272_v17  ;;  %v258_v30 = vmul.f32 %v2554_v18, %v2554_v18  ;;  %v235_v35 = vmul.f32 0.5, %v2483_v7 }
 0x13e   :  { %v344_v20 = vadd.f32 1.0, %v2195_v10  ;;  %v275_v29 = vmul.f32 %v259_v23, %v2546_v15  ;;  %2204 = vtanh.f32 %v319_v26  ;;  %v2579_v36 = vadd.f32 %v1986_v50, %v2446_v40 }
 0x13f   :  { %v318_v37 = vmul.f32 0.7978846, %v302_v27  ;;  %v304_v38 = vadd.f32 %v288_v28, %v2530_v2  ;;  %v274_v41 = vmul.f32 %v258_v30, %v2554_v18  ;;  %v265_v46 = vmul.f32 %v249_v33, %v2562_v24 }
 0x140   :  { %v2197_v21 = vpop.eup %2196  ;;  %v2573_v57 = vmul.f32 %v344_v20, %v232_v25  ;;  %v291_v39 = vmul.f32 0.044715, %v275_v29  ;;  %v237_v40 = vmul.f32 0.5, %v2496_v19  ;;  %v257_v47 = vmul.f32 %v2579_v36, %v2579_v36 }
 0x141   :  { %520 = vrot.lane.b32.xlu1 %v2556_v52, %s2340_s21  ;;  %516 = vrot.lane.b32.xlu0 %v2537_v5, %s2340_s21  ;;  %v347_v32 = vadd.f32 1.0, %v2197_v21  ;;  %2206 = vtanh.f32 %v318_v37  ;;  %v320_v48 = vmul.f32 0.7978846, %v304_v38  ;;  %v290_v53 = vmul.f32 0.044715, %v274_v41 }
 0x142   :  { %v307_v50 = vadd.f32 %v291_v39, %v2546_v15  ;;  %v281_v58 = vmul.f32 0.044715, %v265_v46  ;;  %v236_v19 = vmul.f32 0.5, %v2500_v22  ;;  %v273_v42 = vmul.f32 %v257_v47, %v2579_v36  ;;  %v2683_v46 = vld [vmem:[#allocation7 + $0xc] ss:$0 sm:$0xff] }
 0x143   :  { %v2587_v43 = vmul.f32 %v347_v32, %v235_v35  ;;  %2208 = vtanh.f32 %v320_v48  ;;  %v306_v60 = vadd.f32 %v290_v53, %v2554_v18  ;;  %v234_v1 = vmul.f32 0.5, %v2488_v11  ;;  %v2687_v47 = vld [vmem:[#allocation7 + $0xf] ss:$0 sm:$0xff] }
 0x144   :  { %v2199_v63 = vpop.eup %2198  ;;  %v323_v59 = vmul.f32 0.7978846, %v307_v50  ;;  %v297_v22 = vadd.f32 %v281_v58, %v2562_v24  ;;  %v289_v44 = vmul.f32 0.044715, %v273_v42  ;;  %v239_v9 = vmul.f32 0.5, %v2510_v31 }
 0x145   :  { %524 = vrot.lane.b32.xlu1 %v2573_v57, %s2340_s21  ;;  %473 = vrot.lane.b32.xlu0 %v2539_v6, %s2341_s22  ;;  %v349_v45 = vadd.f32 1.0, %v2199_v63  ;;  %v2201_v7 = vpop.eup %2200  ;;  %v322_v49 = vmul.f32 0.7978846, %v306_v60  ;;  %v238_v16 = vmul.f32 0.5, %v2514_v34  ;;  %v240_v23 = vmul.f32 0.5, %v2530_v2 }
 0x146   :  { %v2203_v54 = vpop.eup %2202  ;;  %v348_v56 = vadd.f32 1.0, %v2201_v7  ;;  %2210 = vtanh.f32 %v323_v59  ;;  %v313_v11 = vmul.f32 0.7978846, %v297_v22  ;;  %v305_v10 = vadd.f32 %v289_v44, %v2579_v36 }
 0x147   :  { %v2598_v55 = vmul.f32 %v349_v45, %v237_v40  ;;  %v346_v62 = vadd.f32 1.0, %v2203_v54  ;;  %2212 = vtanh.f32 %v322_v49  ;;  %v243_v27 = vmul.f32 0.5, %v2546_v15  ;;  %v2685_v40 = vld [vmem:[#allocation7 + $0x9] ss:$0 sm:$0xff] }
 0x148   :  { %v2205_v61 = vpop.eup %2204  ;;  %v2607_v0 = vmul.f32 %v348_v56, %v236_v19  ;;  %2214 = vtanh.f32 %v313_v11  ;;  %v321_v31 = vmul.f32 0.7978846, %v305_v10  ;;  %v242_v30 = vmul.f32 0.5, %v2554_v18 }
 0x149   :  { %481 = vrot.lane.b32.xlu1 %v2587_v43, %s2341_s22  ;;  %471 = vrot.lane.b32.xlu0 %v2556_v52, %s2341_s22  ;;  %v2615_v3 = vmul.f32 %v346_v62, %v234_v1  ;;  %v351_v4 = vadd.f32 1.0, %v2205_v61  ;;  %v233_v33 = vmul.f32 0.5, %v2562_v24  ;;  %v241_v37 = vmul.f32 0.5, %v2579_v36 }
 0x14a   :  { %2216 = vtanh.f32 %v321_v31  ;;  %v388_v24 = vlaneseq  ;;  %v2693_v53 = vmul.f32 %v2683_v46, %v2521_v51  ;;  %v2706_v58 = vmul.f32 %v2685_v40, %v2521_v51 }
 0x14b   :  { %v2207_v8 = vpop.eup %2206  ;;  %v2623_v12 = vmul.f32 %v351_v4, %v239_v9  ;;  %v2711_v19 = vmul.f32 %v2687_v47, %v2521_v51  ;;  %v2720_v59 = vmul.f32 %v2683_v46, %v2537_v5  ;;  %v2732_v51 = vmul.f32 %v2685_v40, %v2537_v5 }
 0x14c   :  { %v350_v13 = vadd.f32 1.0, %v2207_v8  ;;  %v2675_v36 = vshrl.u32 %v388_v24, 7  ;;  %v2681_v45 = vand.u32 127, %v388_v24  ;;  %v2745_v49 = vmul.f32 %v2687_v47, %v2537_v5 }
 0x14d   :  { %912 = vrot.lane.b32.xlu1 %v2598_v55, %s2341_s22  ;;  %475 = vrot.lane.b32.xlu0 %v2573_v57, %s2341_s22  ;;  %v2209_v14 = vpop.eup %2208  ;;  %v2749_v4 = vmul.f32 %v2683_v46, %v2556_v52  ;;  %v2753_v8 = vmul.f32 %v2683_v46, %v2539_v6  ;;  %v2757_v9 = vmul.f32 %v2685_v40, %v2556_v52  ;;  %v4376_v60 = vmov 0 }
 0x14e   :  { %v2630_v17 = vmul.f32 %v350_v13, %v238_v16  ;;  %v352_v20 = vadd.f32 1.0, %v2209_v14  ;;  %v390_v39 = vadd.s32 8, %v2675_v36  ;;  %v2679_v41 = vadd.s32 16, %v2675_v36 }
 0x14f   :  { %v399_v50 = vand.u32 3, %v2675_v36  ;;  %v2696_v54 = vadd.s32 24, %v2675_v36  ;;  %vm4310_vm0 = vcmp.lt.s32.totalorder %v2681_v45, 32  ;;  %vm491_vm2 = vcmp.lt.s32.totalorder %v2675_v36, 1 }
 0x150   :  { %v2211_v21 = vpop.eup %2210  ;;  %v2637_v34 = vmul.f32 %v352_v20, %v240_v23  ;;  %v400_v7 = vand.u32 3, %v390_v39  ;;  %v401_v48 = vand.u32 3, %v2679_v41  ;;  %vm407_vm3 = vcmp.ge.s32.totalorder %v2681_v45, 32  ;;  %v2859_v41 = vld [vmem:[#allocation7 + $0xb] ss:$0 sm:$0xff] }
 0x151   :  { %910 = vrot.lane.b32.xlu1 %v2607_v0, %s2341_s22  ;;  %530 = vrot.lane.b32.xlu0 %v2587_v43, %s2340_s21  ;;  %v355_v25 = vadd.f32 1.0, %v2211_v21  ;;  %v2213_v26 = vpop.eup %2212  ;;  %vm426_vm4 = vcmp.ge.s32.totalorder %v2681_v45, 96  ;;  %vm2726_vm7 = vcmp.lt.s32.totalorder %v399_v50, 3  ;;  %v2735_v62 = vadd.s32 32, %v2675_v36 }
 0x152   :  { %v354_v28 = vadd.f32 1.0, %v2213_v26  ;;  %v2215_v29 = vpop.eup %2214  ;;  %vm2699_vm1 = vcmp.gt.s32.totalorder %v400_v7, 0  ;;  %vm2714_vm5 = vcmp.lt.s32.totalorder %v400_v7, 3  ;;  %vm2722_vm6 = vcmp.lt.s32.totalorder %v401_v48, 3  ;;  %v2861_v7 = vld [vmem:[#allocation7 + $0x8] ss:$0 sm:$0xff] }
 0x153   :  { %v2644_v2 = vmul.f32 %v355_v25, %v243_v27  ;;  %v345_v32 = vadd.f32 1.0, %v2215_v29  ;;  %4341 = vst [vmem:[#allocation13_spill] sm:$0xff] %v2735_v62  ;;  %vm4287_vm8 = vcmp.lt.s32.totalorder %v2675_v36, 7  ;;  %v402_v44 = vand.u32 3, %v2696_v54  ;;  %vm2829_vm11 = vmand %vm4310_vm0, %vm2699_vm1 }
 0x154   :  { %v2651_v15 = vmul.f32 %v354_v28, %v242_v30  ;;  %v2217_v63 = vpop.eup %2216  ;;  %v2761_v11 = vmul.f32 %v2685_v40, %v2539_v6  ;;  %v2765_v5 = vmul.f32 %v2687_v47, %v2556_v52  ;;  %v2769_v10 = vmul.f32 %v2687_v47, %v2539_v6  ;;  %vm2894_vm14 = vmand %vm426_vm4, %vm2714_vm5 }
 0x155   :  { %958 = vrot.lane.b32.xlu1 %v2607_v0, %s2340_s21  ;;  %479 = vrot.lane.b32.xlu0 %v2615_v3, %s2341_s22  ;;  %v2658_v35 = vmul.f32 %v345_v32, %v233_v33  ;;  %v353_v18 = vadd.f32 1.0, %v2217_v63  ;;  %vm4301_vm9 = vcmp.lt.s32.totalorder %v2681_v45, 96  ;;  %v2774_v13 = vmul.f32 %v2683_v46, %v2573_v57  ;;  %vm2920_vm1 = vmand %vm426_vm4, %vm2722_vm6 }
 0x156   :  { %v2778_v14 = vmul.f32 %v2685_v40, %v2573_v57  ;;  %v2782_v16 = vmul.f32 %v2687_v47, %v2573_v57  ;;  %v2785_v52 = vadd.s32 56, %v2675_v36  ;;  %v2790_v31 = vmul.f32 %v2683_v46, %v2598_v55  ;;  %vm2932_vm5 = vmand %vm426_vm4, %vm2726_vm7 }
 0x157   :  { %v2665_v38 = vmul.f32 %v353_v18, %v241_v37  ;;  %v2794_v20 = vmul.f32 %v2685_v40, %v2598_v55  ;;  %v2798_v21 = vmul.f32 %v2687_v47, %v2598_v55  ;;  %vm2804_vm10 = vcmp.lt.s32.totalorder %v402_v44, 3 }
 0x158   :  { %4342 = vst [vmem:[#allocation14_spill] sm:$0xff] %v2785_v52  ;;  %4343 = vst [vmem:[#allocation15_spill] sm:$0xff] %v2790_v31  ;;  %v2810_v26 = vmul.f32 %v2683_v46, %v2587_v43  ;;  %v2814_v27 = vmul.f32 %v2685_v40, %v2587_v43  ;;  %v2822_v28 = vmul.f32 %v2683_v46, %v2630_v17  ;;  %vm2842_vm12 = vcmp.gt.s32.totalorder %v399_v50, 0  ;;  %v2863_v50 = vld [vmem:[#allocation7 + $0xe] ss:$0 sm:$0xff] }
 0x159   :  { %964 = vrot.lane.b32.xlu1 %v2623_v12, %s2340_s21  ;;  %960 = vrot.lane.b32.xlu0 %v2598_v55, %s2340_s21  ;;  %4344 = vst [vmem:[#allocation16_spill] sm:$0xff] %v2794_v20  ;;  %4345 = vst [vmem:[#allocation17_spill] sm:$0xff] %v2798_v21  ;;  %v2818_v55 = vmul.f32 %v2687_v47, %v2587_v43  ;;  %v2836_v43 = vmul.f32 %v2683_v46, %v2623_v12  ;;  %vm2871_vm13 = vcmp.gt.s32.totalorder %v401_v48, 0 }
 0x15a   :  { %4348 = vst [vmem:[#allocation18_spill] sm:$0xff] %v2810_v26  ;;  %4349 = vst [vmem:[#allocation19_spill] sm:$0xff] %v2814_v27  ;;  %v2840_v63 = vmul.f32 %v2685_v40, %v2630_v17  ;;  %v2849_v37 = vmul.f32 %v2685_v40, %v2623_v12  ;;  %v2853_v24 = vmul.f32 %v2687_v47, %v2630_v17  ;;  %vm2900_vm15 = vcmp.gt.s32.totalorder %v402_v44, 0 }
 0x15b   :  { %4350 = vst [vmem:[#allocation20_spill] sm:$0xff] %v2818_v55  ;;  %4351 = vst [vmem:[#allocation21_spill] sm:$0xff] %v2822_v28  ;;  %v2857_v39 = vmul.f32 %v2687_v47, %v2623_v12  ;;  %v2881_v56 = vmul.f32 %v2685_v40, %v2607_v0  ;;  %v2885_v18 = vmul.f32 %v2687_v47, %v2607_v0  ;;  %v4373_v44 = vmov 0 }
 0x15c   :  { %4354 = vst [vmem:[#allocation22_spill] sm:$0xff] %v2836_v43  ;;  %4355 = vst [vmem:[#allocation23_spill] sm:$0xff] %v2840_v63  ;;  %v2910_v42 = vmul.f32 %v2685_v40, %v2637_v34  ;;  %v4374_v44 = vsel %vm2920_vm1, 4294967295, %v4373_v44  ;;  %v4377_v60 = vsel %vm2932_vm5, 4294967295, %v4376_v60  ;;  %v2944_v63 = vld [vmem:[#allocation7 + $0x10] ss:$0 sm:$0xff]  ;;  %v3251_v30 = vmul.f32 %v2687_v47, %v2658_v35 }
 0x15d   :  { %962 = vrot.lane.b32.xlu1 %v2630_v17, %s2340_s21  ;;  %916 = vrot.lane.b32.xlu0 %v2623_v12, %s2341_s22  ;;  %4358 = vst [vmem:[#allocation24_spill] sm:$0xff] %v2849_v37  ;;  %4359 = vst [vmem:[#allocation25_spill] sm:$0xff] %v2853_v24  ;;  %v2877_v12 = vmul.f32 %v2683_v46, %v2607_v0  ;;  %v2906_v0 = vmul.f32 %v2683_v46, %v2637_v34  ;;  %v2940_v37 = vld [vmem:[#allocation7 + $0xd] ss:$0 sm:$0xff] }
 0x15e   :  { %4360 = vst [vmem:[#allocation26_spill] sm:$0xff] %v2857_v39  ;;  %4364 = vst [vmem:[#allocation28_spill] sm:$0xff] %v2881_v56 }
 0x15f   :  { %4363 = vst [vmem:[#allocation27_spill] sm:$0xff] %v2877_v12  ;;  %4365 = vst [vmem:[#allocation29_spill] sm:$0xff] %v2885_v18 }
 0x160   :  { %4371 = vst [vmem:[#allocation31_spill] sm:$0xff] %v2906_v0  ;;  %4372 = vst [vmem:[#allocation32_spill] sm:$0xff] %v2910_v42  ;;  %v2942_v0 = vld [vmem:[#allocation7 + $0xa] ss:$0 sm:$0xff] }
 0x161   :  { %966 = vrot.lane.b32.xlu1 %v2637_v34, %s2340_s21  ;;  %914 = vrot.lane.b32.xlu0 %v2630_v17, %s2341_s22  ;;  %4375 = vst [vmem:[#allocation33_spill] sm:$0xff] %v4374_v44  ;;  %4378 = vst [vmem:[#allocation34_spill] sm:$0xff] %v4377_v60  ;;  %v4400_v17 = vmov 0 }
 0x162   :  { %4380 = vst [vmem:[#allocation36_spill] sm:$0xff] %v2940_v37  ;;  %4381 = vst [vmem:[#allocation37_spill] sm:$0xff] %v2944_v63 }
 0x163   :  { %vm2990_vm6 = vmand %vm426_vm4, %vm2804_vm10  ;;  %4433 = vst [vmem:[#allocation59_spill] sm:$0xff] %v3251_v30 }
 0x164   :  { %vm3024_vm7 = vmand %vm4310_vm0, %vm2842_vm12 }
 0x165   :  { %924 = vrot.lane.b32.xlu1 %v2644_v2, %s2341_s22  ;;  %918 = vrot.lane.b32.xlu0 %v2637_v34, %s2341_s22  ;;  %vm3043_vm12 = vmand %vm4310_vm0, %vm2871_vm13  ;;  %vm4302_vm13 = vcmp.lt.s32.totalorder %v2675_v36, 4 }
 0x169   :  { %972 = vrot.lane.b32.xlu1 %v2644_v2, %s2340_s21  ;;  %922 = vrot.lane.b32.xlu0 %v2651_v15, %s2341_s22 }
 0x16d   :  { %526 = vrot.lane.b32.xlu1 %v2658_v35, %s2340_s21  ;;  %477 = vrot.lane.b32.xlu0 %v2658_v35, %s2341_s22 }
 0x171   :  { %968 = vrot.lane.b32.xlu1 %v2665_v38, %s2340_s21  ;;  %920 = vrot.lane.b32.xlu0 %v2665_v38, %s2341_s22 }
 0x175   :  { %970 = vrot.lane.b32.xlu1 %v2651_v15, %s2340_s21  ;;  %528 = vrot.lane.b32.xlu0 %v2615_v3, %s2340_s21 }
 0x1ab   :  { %v2737_v1 = vpop.permute.xlu1 %518  ;;  %v2739_v22 = vpop.permute.xlu0 %469 }
 0x1ac   :  { %v4284_v29 = vrot.slane %v2739_v22, 7  ;;  %v533_v6 = vrot.slane %v2737_v1, 1 }
 0x1af   :  { %v2800_v23 = vpop.permute.xlu1 %522  ;;  %v2802_v57 = vpop.permute.xlu0 %467 }
 0x1b0   :  { %v4285_v32 = vrot.slane %v2802_v57, 7 }
 0x1b2   :  { %v498_v54 = vsel %vm491_vm2, %v4285_v32, %v4284_v29  ;;  %v4366_v29 = vmov 0 }
 0x1b3   :  { %v501_v48 = vsel %vm2829_vm11, %v498_v54, 0.0  ;;  %v4367_v29 = vsel %vm2894_vm14, 4294967295, %v4366_v29  ;;  %v521_v32 = vpop.permute.xlu1 %520  ;;  %v2898_v26 = vpop.permute.xlu0 %516  ;;  %v535_v54 = vrot.slane %v2800_v23, 1 }
 0x1b4   :  { %4368 = vst [vmem:[#allocation30_spill] sm:$0xff] %v4367_v29  ;;  %v509_v18 = vsel %vm407_vm3, %v2739_v22, %v501_v48  ;;  %v534_v56 = vrot.slane %v521_v32, 1  ;;  %v2938_v48 = vmul.f32 %v2687_v47, %v2637_v34  ;;  %v4382_v43 = vrot.slane %v2898_v26, 1 }
 0x1b5   :  { %v571_v39 = vmul.f32 %v2859_v41, %v509_v18  ;;  %v626_v42 = vmul.f32 %v2861_v7, %v509_v18  ;;  %v714_v24 = vmul.f32 %v2863_v50, %v509_v18  ;;  %v2956_v34 = vmul.f32 %v2683_v46, %v2644_v2 }
 0x1b6   :  { %4379 = vst [vmem:[#allocation35_spill] sm:$0xff] %v2938_v48  ;;  %v545_v18 = vsel %vm4287_vm8, %v534_v56, %v535_v54  ;;  %v546_v61 = vsel %vm4287_vm8, %v533_v6, %v534_v56  ;;  %v547_v28 = vsel %vm4287_vm8, %v4382_v43, %v533_v6 }
 0x1b7   :  { %4383 = vst [vmem:[#allocation38_spill] sm:$0xff] %v2956_v34  ;;  %v592_v48 = vadd.f32 %v2693_v53, %v571_v39  ;;  %v647_v21 = vadd.f32 %v2706_v58, %v626_v42  ;;  %v735_v20 = vadd.f32 %v2711_v19, %v714_v24  ;;  %v550_v31 = vsel %vm2894_vm14, %v546_v61, 0.0  ;;  %v2963_v55 = vpop.permute.xlu1 %524  ;;  %v2965_v56 = vpop.permute.xlu0 %473 }
 0x1b8   :  { %4384 = vst [vmem:[#allocation39_spill] sm:$0xff] %v2963_v55  ;;  %v551_v6 = vsel %vm2920_vm1, %v545_v18, 0.0  ;;  %v558_v43 = vsel %vm4301_vm9, %v2737_v1, %v550_v31  ;;  %v549_v53 = vsel %vm2932_vm5, %v547_v28, 0.0  ;;  %v4385_v31 = vmov 0 }
 0x1b9   :  { %v559_v19 = vsel %vm4301_vm9, %v521_v32, %v551_v6  ;;  %v605_v24 = vmul.f32 %v2940_v37, %v558_v43  ;;  %v660_v39 = vmul.f32 %v2942_v0, %v558_v43  ;;  %v748_v42 = vmul.f32 %v2944_v63, %v558_v43 }
 0x1ba   :  { %v2981_v18 = vmul.f32 %v2940_v37, %v559_v19  ;;  %v557_v1 = vsel %vm4301_vm9, %v2898_v26, %v549_v53  ;;  %v4386_v31 = vsel %vm2990_vm6, 4294967295, %v4385_v31  ;;  %v2996_v28 = vmul.f32 %v2685_v40, %v2644_v2 }
 0x1bb   :  { %4387 = vst [vmem:[#allocation40_spill] sm:$0xff] %v4386_v31  ;;  %v3000_v32 = vmul.f32 %v2687_v47, %v2644_v2  ;;  %v3002_v61 = vadd.f32 %v605_v24, %v592_v48  ;;  %v661_v6 = vmul.f32 %v2942_v0, %v559_v19  ;;  %v3005_v43 = vadd.f32 %v660_v39, %v647_v21  ;;  %v3009_v53 = vpop.permute.xlu1 %481  ;;  %v472_v58 = vpop.permute.xlu0 %471 }
 0x1bc   :  { %4388 = vst [vmem:[#allocation41_spill] sm:$0xff] %v2996_v28  ;;  %v3007_v25 = vadd.f32 %v748_v42, %v735_v20  ;;  %v3012_v34 = vmul.f32 %v2944_v63, %v559_v19  ;;  %v604_v28 = vmul.f32 %v2940_v37, %v557_v1  ;;  %v659_v44 = vmul.f32 %v2942_v0, %v557_v1 }
 0x1bd   :  { %4389 = vst [vmem:[#allocation42_spill] sm:$0xff] %v3000_v32  ;;  %v4390_v2 = vrot.slane %v2963_v55, 1  ;;  %v4391_v20 = vmov 0  ;;  %v4394_v21 = vand.u32 3, %v2735_v62  ;;  %v747_v24 = vmul.f32 %v2944_v63, %v557_v1 }
 0x1be   :  { %v4392_v20 = vsel %vm3024_vm7, 4294967295, %v4391_v20  ;;  %v4397_v42 = vmov 0 }
 0x1bf   :  { %v544_v48 = vsel %vm4287_vm8, %v535_v54, %v4390_v2  ;;  %4393 = vst [vmem:[#allocation43_spill] sm:$0xff] %v4392_v20  ;;  %vm3030_vm10 = vcmp.gt.s32.totalorder %v4394_v21, 0  ;;  %v486_v54 = vrot.slane %v2965_v56, 7  ;;  %v4398_v42 = vsel %vm3043_vm12, 4294967295, %v4397_v42  ;;  %vm3056_vm8 = vmand %vm4310_vm0, %vm2900_vm15  ;;  %v3072_v55 = vpop.permute.xlu0 %475 }
 0x1c0   :  { %v552_v39 = vsel %vm2990_vm6, %v544_v48, 0.0  ;;  %4399 = vst [vmem:[#allocation44_spill] sm:$0xff] %v4398_v42  ;;  %v4401_v17 = vsel %vm3056_vm8, 4294967295, %v4400_v17  ;;  %v485_v48 = vrot.slane %v472_v58, 7  ;;  %v4403_v21 = vrot.slane %v2802_v57, 7  ;;  %vm3128_vm15 = vmand %vm4310_vm0, %vm3030_vm10 }
 0x1c1   :  { %v560_v1 = vsel %vm4301_vm9, %v2800_v23, %v552_v39  ;;  %4402 = vst [vmem:[#allocation45_spill] sm:$0xff] %v4401_v17  ;;  %v4404_v23 = vrot.slane %v3009_v53, 7  ;;  %v3070_v39 = vpop.permute.xlu1 %912 }
 0x1c2   :  { %v607_v33 = vmul.f32 %v2940_v37, %v560_v1  ;;  %v662_v32 = vmul.f32 %v2942_v0, %v560_v1  ;;  %v750_v2 = vmul.f32 %v2944_v63, %v560_v1  ;;  %v496_v31 = vsel %vm491_vm2, %v485_v48, %v486_v54 }
 0x1c3   :  { %v499_v12 = vsel %vm491_vm2, %v4404_v23, %v4403_v21  ;;  %v4405_v1 = vrot.slane %v2739_v22, 7 }
 0x1c4   :  { %v500_v62 = vsel %vm3024_vm7, %v499_v12, 0.0  ;;  %v503_v12 = vsel %vm3056_vm8, %v496_v31, 0.0 }
 0x1c5   :  { %v497_v37 = vsel %vm491_vm2, %v4405_v1, %v485_v48  ;;  %v508_v21 = vsel %vm407_vm3, %v2802_v57, %v500_v62  ;;  %v511_v62 = vsel %vm407_vm3, %v2965_v56, %v503_v12  ;;  %v3102_v29 = vpop.permute.xlu1 %910 }
 0x1c6   :  { %v502_v23 = vsel %vm3043_vm12, %v497_v37, 0.0  ;;  %v570_v60 = vmul.f32 %v2859_v41, %v508_v21  ;;  %v625_v22 = vmul.f32 %v2861_v7, %v508_v21  ;;  %v713_v48 = vmul.f32 %v2863_v50, %v508_v21 }
 0x1c7   :  { %v510_v1 = vsel %vm407_vm3, %v472_v58, %v502_v23  ;;  %v573_v58 = vmul.f32 %v2859_v41, %v511_v62  ;;  %v3108_v23 = vpop.permute.xlu0 %530  ;;  %v628_v12 = vmul.f32 %v2861_v7, %v511_v62 }
 0x1c8   :  { %v572_v57 = vmul.f32 %v2859_v41, %v510_v1  ;;  %v627_v37 = vmul.f32 %v2861_v7, %v510_v1  ;;  %v715_v31 = vmul.f32 %v2863_v50, %v510_v1  ;;  %v591_v20 = vadd.f32 %v2720_v59, %v570_v60  ;;  %4406 = vst [vmem:[#allocation46_spill] sm:$0xff] %v3108_v23 }
 0x1c9   :  { %v646_v42 = vadd.f32 %v2732_v51, %v625_v22  ;;  %v734_v21 = vadd.f32 %v2745_v49, %v713_v48  ;;  %v716_v1 = vmul.f32 %v2863_v50, %v511_v62  ;;  %v594_v51 = vadd.f32 %v2753_v8, %v573_v58  ;;  %v3138_v8 = vpop.permute.xlu1 %958 }
 0x1ca   :  { %v593_v56 = vadd.f32 %v2749_v4, %v572_v57  ;;  %v648_v17 = vadd.f32 %v2757_v9, %v627_v37  ;;  %v3114_v27 = vadd.f32 %v604_v28, %v591_v20  ;;  %v649_v60 = vadd.f32 %v2761_v11, %v628_v12 }
 0x1cb   :  { %v3116_v63 = vadd.f32 %v659_v44, %v646_v42  ;;  %v3118_v59 = vadd.f32 %v747_v24, %v734_v21  ;;  %v736_v4 = vadd.f32 %v2765_v5, %v715_v31  ;;  %v4412_v44 = vand.u32 3, %v2785_v52 }
 0x1cc   :  { %4407 = vst [vmem:[#allocation47_spill] sm:$0xff] %v3114_v27  ;;  %v614_v49 = vadd.f32 %v2981_v18, %v593_v56  ;;  %v669_v22 = vadd.f32 %v661_v6, %v648_v17  ;;  %v615_v18 = vadd.f32 %v607_v33, %v594_v51  ;;  %v737_v6 = vadd.f32 %v2769_v10, %v716_v1  ;;  %v3168_v33 = vpop.permute.xlu0 %479  ;;  %v4452_v27 = vld [vmem:[#allocation37_spill] sm:$0xff] }
 0x1cd   :  { %4408 = vst [vmem:[#allocation48_spill] sm:$0xff] %v3116_v63  ;;  %4409 = vst [vmem:[#allocation49_spill] sm:$0xff] %v3118_v59  ;;  %vm3134_vm9 = vcmp.lt.s32.totalorder %v4412_v44, 3  ;;  %v4305_v11 = vrot.slane %v3116_v63, 4  ;;  %v4303_v5 = vrot.slane %v3118_v59, 4  ;;  %v3143_v20 = vadd.f32 %v662_v32, %v649_v60  ;;  %v3176_v56 = vpop.permute.xlu1 %964 }
 0x1ce   :  { %v677_v19 = vrot.slane %v669_v22, 4  ;;  %v757_v24 = vadd.f32 %v3012_v34, %v736_v4  ;;  %v4416_v42 = vrot.slane %v3072_v55, 7  ;;  %v4417_v48 = vrot.slane %v3007_v25, 4  ;;  %v3183_v60 = vld [vmem:[#allocation7 + $0x12] ss:$0 sm:$0xff] }
 0x1cf   :  { %4415 = vst [vmem:[#allocation50_spill] sm:$0xff] %v3143_v20  ;;  %v4419_v10 = vrot.slane %v3005_v43, 4  ;;  %v3164_v32 = vadd.f32 %v750_v2, %v737_v6  ;;  %v4307_v57 = vrot.slane %v3143_v20, 4  ;;  %v4309_v51 = vrot.slane %v3102_v29, 7 }
 0x1d0   :  { %v495_v17 = vsel %vm491_vm2, %v486_v54, %v4416_v42  ;;  %v3156_v62 = vsel %vm4302_vm13, %v4303_v5, %v4417_v48  ;;  %v765_v58 = vrot.slane %v757_v24, 4  ;;  %v3259_v28 = vmul.f32 %v2685_v40, %v2665_v38 }
 0x1d1   :  { %4418 = vst [vmem:[#allocation51_spill] sm:$0xff] %v3156_v62  ;;  %v690_v34 = vsel %vm4302_vm13, %v4305_v11, %v4419_v10  ;;  %4420 = vst [vmem:[#allocation52_spill] sm:$0xff] %v3164_v32  ;;  %v504_v54 = vsel %vm3128_vm15, %v495_v17, 0.0  ;;  %v4421_v37 = vmov %v4419_v10  ;;  %v4306_v2 = vrot.slane %v3164_v32, 4  ;;  %v4480_v32 = vld [vmem:[#allocation25_spill] sm:$0xff] }
 0x1d2   :  { %v689_v31 = vsel %vm4302_vm13, %v4421_v37, %v677_v19  ;;  %v701_v21 = vadd.f32 %v690_v34, %v3002_v61  ;;  %v512_v1 = vsel %vm407_vm3, %v3072_v55, %v504_v54  ;;  %v688_v43 = vsel %vm4302_vm13, %v677_v19, %v4307_v57  ;;  %v3223_v37 = vpop.permute.xlu1 %962  ;;  %4435 = vst [vmem:[#allocation61_spill] sm:$0xff] %v3259_v28 }
 0x1d3   :  { %v702_v12 = vadd.f32 %v689_v31, %v614_v49  ;;  %v4422_v61 = vmov %v4417_v48  ;;  %v574_v22 = vmul.f32 %v2859_v41, %v512_v1  ;;  %v629_v4 = vmul.f32 %v2861_v7, %v512_v1 }
 0x1d4   :  { %v776_v49 = vsel %vm4302_vm13, %v4422_v61, %v765_v58  ;;  %v3195_v44 = vadd.f32 %v688_v43, %v615_v18  ;;  %v775_v6 = vsel %vm4302_vm13, %v765_v58, %v4306_v2  ;;  %v717_v42 = vmul.f32 %v2863_v50, %v512_v1  ;;  %vm3241_vm13 = vmand %vm426_vm4, %vm3134_vm9 }
 0x1d5   :  { %v788_v24 = vadd.f32 %v776_v49, %v701_v21  ;;  %v789_v19 = vadd.f32 %v775_v6, %v702_v12  ;;  %v3203_v25 = vadd.f32 %v2774_v13, %v574_v22  ;;  %v3206_v17 = vadd.f32 %v2778_v14, %v629_v4  ;;  %v3221_v13 = vpop.permute.xlu0 %960 }
 0x1d6   :  { %4423 = vst [vmem:[#allocation53_spill] sm:$0xff] %v3195_v44  ;;  %v4425_v48 = vrot.slane %v3070_v39, 7  ;;  %v3218_v34 = vadd.f32 %v2782_v16, %v717_v42  ;;  %v4304_v54 = vrot.slane %v3108_v23, 1  ;;  %v3227_v14 = vmul.f32 %v2683_v46, %v2658_v35 }
 0x1d7   :  { %4424 = vst [vmem:[#allocation54_spill] sm:$0xff] %v3203_v25  ;;  %v3215_v10 = vadd.f32 %v3183_v60, %v788_v24  ;;  %v3230_v31 = vadd.f32 %v3183_v60, %v789_v19  ;;  %v4429_v58 = vand.u32 3, %v2785_v52  ;;  %v4308_v16 = vrot.slane %v3168_v33, 7 }
 0x1d8   :  { %v940_v18 = vsel %vm491_vm2, %v4309_v51, %v4425_v48  ;;  %4427 = vst [vmem:[#allocation56_spill] sm:$0xff] %v3227_v14  ;;  %v3247_v1 = vmul.f32 %v2685_v40, %v2658_v35  ;;  %v3255_v43 = vmul.f32 %v2683_v46, %v2665_v38  ;;  %v4436_v49 = vrot.slane %v2898_v26, 1  ;;  %v4479_v14 = vld [vmem:[#allocation24_spill] sm:$0xff] }
 0x1d9   :  { %4426 = vst [vmem:[#allocation55_spill] sm:$0xff] %v3215_v10  ;;  %4428 = vst [vmem:[#allocation57_spill] sm:$0xff] %v3230_v31  ;;  %v943_v21 = vsel %vm2829_vm11, %v940_v18, 0.0  ;;  %vm416_vm10 = vcmp.gt.s32.totalorder %v4429_v58, 0  ;;  %v817_v61 = vmul.f32 %v3215_v10, %v3215_v10  ;;  %vm4437_vm9 = vcmp.lt.s32.totalorder %v2675_v36, 7  ;;  %v3313_v58 = vpop.permute.xlu0 %916 }
 0x1da   :  { %4432 = vst [vmem:[#allocation58_spill] sm:$0xff] %v3247_v1  ;;  %4434 = vst [vmem:[#allocation60_spill] sm:$0xff] %v3255_v43  ;;  %v548_v22 = vsel %vm4437_vm9, %v4304_v54, %v4436_v49  ;;  %v3271_v35 = vmul.f32 %v2687_v47, %v2665_v38  ;;  %v3275_v4 = vmul.f32 %v2683_v46, %v2651_v15  ;;  %v4445_v18 = vrot.slane %v3009_v53, 7  ;;  %v3315_v49 = vpop.permute.xlu1 %966 }
 0x1db   :  { %v951_v6 = vsel %vm407_vm3, %v3070_v39, %v943_v21  ;;  %vm3282_vm11 = vmand %vm4310_vm0, %vm416_vm10  ;;  %v3288_v24 = vmul.f32 %v2685_v40, %v2651_v15  ;;  %v3292_v38 = vmul.f32 %v2687_v47, %v2651_v15  ;;  %v3296_v42 = vmul.f32 %v2683_v46, %v2615_v3 }
 0x1dc   :  { %4438 = vst [vmem:[#allocation62_spill] sm:$0xff] %v3271_v35  ;;  %4439 = vst [vmem:[#allocation63_spill] sm:$0xff] %v3275_v4  ;;  %v818_v19 = vmul.f32 %v3230_v31, %v3230_v31  ;;  %v556_v48 = vsel %vm3241_vm13, %v548_v22, 0.0  ;;  %v492_v21 = vsel %vm491_vm2, %v4308_v16, %v4445_v18  ;;  %v3310_v15 = vmul.f32 %v2685_v40, %v2615_v3 }
 0x1dd   :  { %4442 = vst [vmem:[#allocation64_spill] sm:$0xff] %v3288_v24  ;;  %4443 = vst [vmem:[#allocation65_spill] sm:$0xff] %v3292_v38  ;;  %v3318_v5 = vadd.s32 40, %v2675_v36  ;;  %v3321_v22 = vadd.s32 48, %v2675_v36  ;;  %v3325_v54 = vmul.f32 %v2687_v47, %v2615_v3  ;;  %v825_v18 = vmul.f32 %v817_v61, %v3215_v10  ;;  %v915_v24 = vpop.permute.xlu0 %914 }
 0x1de   :  { %4444 = vst [vmem:[#allocation66_spill] sm:$0xff] %v3296_v42  ;;  %4446 = vst [vmem:[#allocation67_spill] sm:$0xff] %v3310_v15  ;;  %v1012_v40 = vmul.f32 %v2859_v41, %v951_v6  ;;  %v507_v11 = vsel %vm3282_vm11, %v492_v21, 0.0  ;;  %v975_v2 = vrot.slane %v3221_v13, 1  ;;  %vm4448_vm10 = vcmp.lt.s32.totalorder %v2681_v45, 96  ;;  %v3369_v35 = vpop.permute.xlu1 %924 }
 0x1df   :  { %4447 = vst [vmem:[#allocation68_spill] sm:$0xff] %v3325_v54  ;;  %v3335_v57 = vsel %vm4448_vm10, %v3108_v23, %v556_v48  ;;  %v3340_v16 = vsel %vm407_vm3, %v3009_v53, %v507_v11  ;;  %v977_v3 = vrot.slane %v3176_v56, 1  ;;  %v976_v47 = vrot.slane %v3223_v37, 1  ;;  %vm4450_vm10 = vmmov %vm4437_vm9  ;;  %v4453_v23 = vld [vmem:[#allocation19_spill] sm:$0xff] }
 0x1e0   :  { %v826_v61 = vmul.f32 %v818_v19, %v3230_v31  ;;  %v1067_v21 = vmul.f32 %v2861_v7, %v951_v6  ;;  %v632_v51 = vmul.f32 %v2861_v7, %v3340_v16  ;;  %v720_v48 = vmul.f32 %v2863_v50, %v3340_v16  ;;  %vm4451_vm0 = vmmov %vm4437_vm9 }
 0x1e1   :  { %v1154_v46 = vmul.f32 %v2863_v50, %v951_v6  ;;  %v4449_v62 = vrot.slane %v3138_v8, 1  ;;  %v986_v11 = vsel %vm4450_vm10, %v976_v47, %v977_v3  ;;  %v987_v19 = vsel %vm4451_vm0, %v975_v2, %v976_v47  ;;  %v4454_v6 = vld [vmem:[#allocation20_spill] sm:$0xff] }
 0x1e2   :  { %v666_v59 = vmul.f32 %v2942_v0, %v3335_v57  ;;  %v754_v54 = vmul.f32 %v4452_v27, %v3335_v57  ;;  %v653_v63 = vadd.f32 %v4453_v23, %v632_v51  ;;  %v741_v15 = vadd.f32 %v4454_v6, %v720_v48 }
 0x1e3   :  { %v988_v53 = vsel %vm4437_vm9, %v4449_v62, %v975_v2  ;;  %v833_v42 = vmul.f32 0.044715, %v825_v18  ;;  %v991_v38 = vsel %vm2894_vm14, %v987_v19, 0.0  ;;  %v834_v47 = vmul.f32 0.044715, %v826_v61  ;;  %v4460_v18 = vld [vmem:[#allocation15_spill] sm:$0xff] }
 0x1e4   :  { %v990_v62 = vsel %vm2932_vm5, %v988_v53, 0.0  ;;  %v3372_v52 = vadd.f32 %v666_v59, %v653_v63  ;;  %v3374_v4 = vadd.f32 %v754_v54, %v741_v15  ;;  %v992_v51 = vsel %vm2920_vm1, %v986_v11, 0.0  ;;  %v4463_v59 = vld [vmem:[#allocation16_spill] sm:$0xff]  ;;  %v4464_v15 = vld [vmem:[#allocation17_spill] sm:$0xff]  ;;  %vm4467_vm5 = vmmov %vm4437_vm9 }
 0x1e5   :  { %v3379_v48 = vadd.f32 %v4460_v18, %v1012_v40  ;;  %vm4461_vm0 = vcmp.lt.s32.totalorder %v2681_v45, 96  ;;  %v1088_v54 = vadd.f32 %v4463_v59, %v1067_v21  ;;  %v1175_v61 = vadd.f32 %v4464_v15, %v1154_v46  ;;  %v3423_v18 = vpop.permute.xlu0 %918  ;;  %v3425_v59 = vpop.permute.xlu1 %972 }
 0x1e6   :  { %4457 = vst [vmem:[#allocation37_spill] sm:$0xff] %v3372_v52  ;;  %4458 = vst [vmem:[#allocation19_spill] sm:$0xff] %v3374_v4  ;;  %v3384_v1 = vsel %vm4461_vm0, %v3138_v8, %v990_v62  ;;  %v3395_v11 = vadd.f32 %v833_v42, %v3215_v10  ;;  %v929_v6 = vrot.slane %v3313_v58, 7  ;;  %v928_v42 = vrot.slane %v915_v24, 7  ;;  %v4466_v62 = vld [vmem:[#allocation36_spill] sm:$0xff] }
 0x1e7   :  { %vm4462_vm14 = vmmov %vm4461_vm0  ;;  %v3407_v46 = vmul.f32 %v2942_v0, %v3384_v1  ;;  %v3411_v21 = vmul.f32 %v4452_v27, %v3384_v1  ;;  %v4472_v2 = vrot.slane %v3102_v29, 7  ;;  %v3523_v9 = vmul.f32 %v4466_v62, %v3335_v57 }
 0x1e8   :  { %v999_v30 = vsel %vm4462_vm14, %v3221_v13, %v991_v38  ;;  %vm4465_vm1 = vmmov %vm4461_vm0  ;;  %v4316_v13 = vrot.slane %v3315_v49, 1  ;;  %v3403_v38 = vadd.f32 %v834_v47, %v3230_v31 }
 0x1e9   :  { %v1101_v53 = vmul.f32 %v2942_v0, %v999_v30  ;;  %v1188_v40 = vmul.f32 %v4452_v27, %v999_v30  ;;  %v1000_v19 = vsel %vm4465_vm1, %v3223_v37, %v992_v51  ;;  %v3414_v23 = vmul.f32 %v4466_v62, %v999_v30 }
 0x1ea   :  { %v985_v47 = vsel %vm4467_vm5, %v977_v3, %v4316_v13  ;;  %v1047_v15 = vmul.f32 %v4466_v62, %v1000_v19  ;;  %v1189_v3 = vmul.f32 %v4452_v27, %v1000_v19  ;;  %v4469_v13 = vrot.slane %v3070_v39, 7 }
 0x1eb   :  { %v3416_v37 = vadd.f32 %v1101_v53, %v1088_v54  ;;  %v3428_v63 = vadd.f32 %v1188_v40, %v1175_v61  ;;  %v993_v30 = vsel %vm2990_vm6, %v985_v47, 0.0  ;;  %v938_v54 = vsel %vm491_vm2, %v928_v42, %v929_v6  ;;  %vm4474_vm6 = vmmov %vm4461_vm0 }
 0x1ec   :  { %v1102_v53 = vmul.f32 %v2942_v0, %v1000_v19  ;;  %v939_v51 = vsel %vm491_vm2, %v4469_v13, %v928_v42  ;;  %v945_v10 = vsel %vm3056_vm8, %v938_v54, 0.0  ;;  %v4473_v47 = vrot.slane %v3369_v35, 7  ;;  %v4478_v19 = vld [vmem:[#allocation23_spill] sm:$0xff] }
 0x1ed   :  { %v944_v40 = vsel %vm3043_vm12, %v939_v51, 0.0  ;;  %v1001_v31 = vsel %vm4474_vm6, %v3176_v56, %v993_v30  ;;  %v953_v42 = vsel %vm407_vm3, %v3313_v58, %v945_v10  ;;  %v1204_v51 = vrot.slane %v3428_v63, 4  ;;  %v4476_v10 = vld [vmem:[#allocation21_spill] sm:$0xff]  ;;  %v4477_v63 = vld [vmem:[#allocation22_spill] sm:$0xff] }
 0x1ee   :  { %v941_v4 = vsel %vm491_vm2, %v4473_v47, %v4472_v2  ;;  %v952_v13 = vsel %vm407_vm3, %v915_v24, %v944_v40  ;;  %v1014_v61 = vmul.f32 %v2859_v41, %v953_v42  ;;  %v1069_v47 = vmul.f32 %v2861_v7, %v953_v42 }
 0x1ef   :  { %v1013_v54 = vmul.f32 %v2859_v41, %v952_v13  ;;  %v1068_v2 = vmul.f32 %v2861_v7, %v952_v13  ;;  %v1155_v39 = vmul.f32 %v2863_v50, %v952_v13  ;;  %v1156_v56 = vmul.f32 %v2863_v50, %v953_v42  ;;  %v4481_v13 = vld [vmem:[#allocation26_spill] sm:$0xff] }
 0x1f0   :  { %v942_v24 = vsel %vm3024_vm7, %v941_v4, 0.0  ;;  %v1103_v40 = vmul.f32 %v2942_v0, %v1001_v31  ;;  %v1035_v52 = vadd.f32 %v4477_v63, %v1014_v61  ;;  %v1190_v43 = vmul.f32 %v4452_v27, %v1001_v31 }
 0x1f1   :  { %v1034_v58 = vadd.f32 %v4476_v10, %v1013_v54  ;;  %v1089_v28 = vadd.f32 %v4478_v19, %v1068_v2  ;;  %v1090_v44 = vadd.f32 %v4479_v14, %v1069_v47  ;;  %v1176_v20 = vadd.f32 %v4480_v32, %v1155_v39 }
 0x1f2   :  { %v1177_v25 = vadd.f32 %v4481_v13, %v1156_v56  ;;  %v1048_v42 = vmul.f32 %v4466_v62, %v1001_v31  ;;  %v950_v4 = vsel %vm407_vm3, %v3102_v29, %v942_v24  ;;  %v4482_v54 = vrot.slane %v3423_v18, 7  ;;  %v4490_v24 = vld [vmem:[#allocation29_spill] sm:$0xff] }
 0x1f3   :  { %v1110_v30 = vadd.f32 %v1102_v53, %v1089_v28  ;;  %v1055_v61 = vadd.f32 %v1047_v15, %v1034_v58  ;;  %v3486_v2 = vadd.f32 %v1103_v40, %v1090_v44  ;;  %v1197_v14 = vadd.f32 %v1189_v3, %v1176_v20  ;;  %v4483_v53 = vld [vmem:[#allocation13_spill] sm:$0xff] }
 0x1f4   :  { %v937_v19 = vsel %vm491_vm2, %v929_v6, %v4482_v54  ;;  %v3488_v47 = vadd.f32 %v1190_v43, %v1177_v25  ;;  %v1056_v32 = vadd.f32 %v1048_v42, %v1035_v52  ;;  %v1066_v31 = vmul.f32 %v2861_v7, %v950_v4  ;;  %v4489_v43 = vld [vmem:[#allocation28_spill] sm:$0xff] }
 0x1f5   :  { %v1118_v39 = vrot.slane %v1110_v30, 4  ;;  %v1153_v28 = vmul.f32 %v2863_v50, %v950_v4  ;;  %v4484_v56 = vand.u32 3, %v4483_v53  ;;  %v4326_v6 = vrot.slane %v3486_v2, 4  ;;  %v3519_v30 = vpop.permute.xlu0 %922  ;;  %v4494_v53 = vld [vmem:[#allocation27_spill] sm:$0xff] }
 0x1f6   :  { %v1205_v15 = vrot.slane %v1197_v14, 4  ;;  %v4325_v44 = vrot.slane %v3488_v47, 4  ;;  %v1011_v20 = vmul.f32 %v2859_v41, %v950_v4  ;;  %v4487_v52 = vrot.slane %v3416_v37, 4 }
 0x1f7   :  { %vm3494_vm8 = vcmp.lt.s32.totalorder %v4484_v56, 3  ;;  %vm4488_vm7 = vcmp.lt.s32.totalorder %v2675_v36, 4  ;;  %v1087_v3 = vadd.f32 %v4489_v43, %v1066_v31  ;;  %v1174_v40 = vadd.f32 %v4490_v24, %v1153_v28 }
 0x1f8   :  { %v1129_v25 = vsel %vm4488_vm7, %v4487_v52, %v1118_v39  ;;  %v946_v10 = vsel %vm3128_vm15, %v937_v19, 0.0  ;;  %vm4491_vm12 = vmmov %vm4488_vm7  ;;  %v577_v14 = vmul.f32 %v2859_v41, %v3340_v16  ;;  %v850_v57 = vmul.f32 0.7978846, %v3403_v38  ;;  %v3553_v52 = vpop.permute.xlu1 %526 }
 0x1f9   :  { %v1128_v58 = vsel %vm4491_vm12, %v1118_v39, %v4326_v6  ;;  %v1142_v63 = vadd.f32 %v1129_v25, %v1055_v61  ;;  %vm4492_vm9 = vmmov %vm4488_vm7  ;;  %v3528_v54 = vadd.f32 %v3407_v46, %v1087_v3  ;;  %v3531_v19 = vadd.f32 %v3411_v21, %v1174_v40 }
 0x1fa   :  { %v1215_v13 = vsel %vm4492_vm9, %v1205_v15, %v4325_v44  ;;  %vm4493_vm10 = vmmov %vm4488_vm7  ;;  %v3525_v4 = vadd.f32 %v1128_v58, %v1056_v32  ;;  %v849_v61 = vmul.f32 0.7978846, %v3395_v11  ;;  %v954_v31 = vsel %vm407_vm3, %v3423_v18, %v946_v10 }
 0x1fb   :  { %v1216_v42 = vsel %vm4493_vm10, %v1204_v51, %v1205_v15  ;;  %v1229_v39 = vadd.f32 %v1215_v13, %v1142_v63  ;;  %v4324_v32 = vrot.slane %v3528_v54, 4  ;;  %v4323_v46 = vrot.slane %v3531_v19, 4  ;;  %vm4497_vm15 = vmmov %vm4467_vm5 }
 0x1fc   :  { %v4328_v28 = vrot.slane %v3519_v30, 7  ;;  %v1054_v21 = vadd.f32 %v3414_v23, %v3379_v48  ;;  %v1032_v16 = vadd.f32 %v4494_v53, %v1011_v20  ;;  %v4495_v56 = vrot.slane %v3138_v8, 1  ;;  %vm4499_vm0 = vmmov %vm4488_vm7 }
 0x1fd   :  { %v1242_v11 = vadd.f32 %v3183_v60, %v1229_v39  ;;  %v4496_v15 = vrot.slane %v3425_v59, 1  ;;  %v4498_v25 = vrot.slane %v3416_v37, 4  ;;  %vm4500_vm14 = vmmov %vm4499_vm0  ;;  %v1015_v8 = vmul.f32 %v2859_v41, %v954_v31 }
 0x1fe   :  { %v3565_v23 = vsel %vm4500_vm14, %v4323_v46, %v1204_v51  ;;  %v4501_v20 = vrot.slane %v3369_v35, 7  ;;  %v4502_v43 = vand.u32 3, %v3318_v5  ;;  %2218 = vtanh.f32 %v849_v61 }
 0x1ff   :  { %v989_v38 = vsel %vm4497_vm15, %v4496_v15, %v4495_v56  ;;  %v1130_v48 = vsel %vm4499_vm0, %v4324_v32, %v4498_v25  ;;  %v1258_v24 = vmul.f32 %v1242_v11, %v1242_v11  ;;  %v1070_v51 = vmul.f32 %v2861_v7, %v954_v31 }
 0x200   :  { %v934_v37 = vsel %vm491_vm2, %v4328_v28, %v4501_v20  ;;  %vm3576_vm1 = vcmp.gt.s32.totalorder %v4502_v43, 0  ;;  %v1141_v40 = vadd.f32 %v1130_v48, %v1054_v21  ;;  %v1045_v10 = vmul.f32 %v4466_v62, %v3384_v1  ;;  %v4512_v48 = vld [vmem:[#allocation32_spill] sm:$0xff] }
 0x201   :  { %v1157_v58 = vmul.f32 %v2863_v50, %v954_v31  ;;  %v997_v63 = vsel %vm3241_vm13, %v989_v38, 0.0  ;;  %v949_v13 = vsel %vm3282_vm11, %v934_v37, 0.0  ;;  %v4505_v39 = vand.u32 3, %v3321_v22  ;;  %vm3601_vm13 = vmand %vm426_vm4, %vm3494_vm8  ;;  %v4510_v31 = vld [vmem:[#allocation18_spill] sm:$0xff]  ;;  %v4513_v37 = vld [vmem:[#allocation39_spill] sm:$0xff] }
 0x202   :  { %v1266_v61 = vmul.f32 %v1258_v24, %v1242_v11  ;;  %v1228_v21 = vadd.f32 %v1216_v42, %v1141_v40  ;;  %v957_v1 = vsel %vm407_vm3, %v3369_v35, %v949_v13  ;;  %v4322_v26 = vrot.slane %v3553_v52, 1  ;;  %v4511_v42 = vld [vmem:[#allocation31_spill] sm:$0xff]  ;;  %v478_v35 = vpop.permute.xlu0 %477  ;;  %vm4515_vm11 = vmmov %vm4497_vm15 }
 0x203   :  { %vm3590_vm5 = vcmp.gt.s32.totalorder %v4505_v39, 0  ;;  %2220 = vtanh.f32 %v850_v57  ;;  %v3607_v56 = vadd.f32 %v4510_v31, %v577_v14  ;;  %v3609_v15 = vadd.f32 %v1045_v10, %v1032_v16  ;;  %v3624_v57 = vpop.permute.xlu1 %968  ;;  %v4516_v16 = vld [vmem:[#allocation35_spill] sm:$0xff]  ;;  %vm4517_vm8 = vmmov %vm4474_vm6 }
 0x204   :  { %v3612_v38 = vadd.f32 %v4511_v42, %v1015_v8  ;;  %v1274_v25 = vmul.f32 0.044715, %v1266_v61  ;;  %v1241_v29 = vadd.f32 %v3183_v60, %v1228_v21  ;;  %v3616_v20 = vadd.f32 %v4512_v48, %v1070_v51  ;;  %vm4530_vm10 = vmmov %vm4515_vm11 }
 0x205   :  { %v4514_v43 = vrot.slane %v4513_v37, 1  ;;  %v1178_v24 = vadd.f32 %v4516_v16, %v1157_v58  ;;  %v1005_v8 = vsel %vm4474_vm6, %v3425_v59, %v997_v63  ;;  %v1018_v40 = vmul.f32 %v2859_v41, %v957_v1 }
 0x206   :  { %v1282_v10 = vadd.f32 %v1274_v25, %v1242_v11  ;;  %v1257_v13 = vmul.f32 %v1241_v29, %v1241_v29  ;;  %v488_v61 = vrot.slane %v478_v35, 7  ;;  %v3636_v21 = vmul.f32 0.5, %v1242_v11 }
 0x207   :  { %v543_v14 = vsel %vm4515_vm11, %v4514_v43, %v4322_v26  ;;  %v1073_v58 = vmul.f32 %v2861_v7, %v957_v1  ;;  %v4327_v63 = vrot.slane %v3624_v57, 1  ;;  %v1194_v11 = vmul.f32 %v4452_v27, %v1005_v8  ;;  %v4519_v26 = vld [vmem:[#allocation38_spill] sm:$0xff] }
 0x208   :  { %v553_v51 = vsel %vm3601_vm13, %v543_v14, 0.0  ;;  %v1290_v42 = vmul.f32 0.7978846, %v1282_v10  ;;  %v1265_v48 = vmul.f32 %v1257_v13, %v1241_v29  ;;  %v3644_v14 = vmul.f32 %v4466_v62, %v1005_v8 }
 0x209   :  { %v561_v39 = vsel %vm4517_vm8, %v4513_v37, %v553_v51  ;;  %v1107_v37 = vmul.f32 %v2942_v0, %v1005_v8  ;;  %v3651_v51 = vpop.eup %2218  ;;  %v3654_v46 = vadd.f32 %v4519_v26, %v1018_v40  ;;  %v1160_v10 = vmul.f32 %v2863_v50, %v957_v1  ;;  %v921_v26 = vpop.permute.xlu0 %920 }
 0x20a   :  { %v663_v31 = vmul.f32 %v2942_v0, %v561_v39  ;;  %v608_v43 = vmul.f32 %v4466_v62, %v561_v39  ;;  %v751_v25 = vmul.f32 %v4452_v27, %v561_v39  ;;  %4518 = vst [vmem:[#allocation20_spill] sm:$0xff] %v3651_v51  ;;  %vm4520_vm7 = vcmp.lt.s32.totalorder %v2681_v45, 32 }
 0x20b   :  { %vm3664_vm12 = vmand %vm4520_vm7, %vm3576_vm1  ;;  %v4524_v40 = vand.u32 3, %v3321_v22  ;;  %2222 = vtanh.f32 %v1290_v42  ;;  %vm4541_vm1 = vcmp.lt.s32.totalorder %v2675_v36, 4 }
 0x20c   :  { %v3649_v16 = vadd.f32 %v663_v31, %v3206_v17  ;;  %v3658_v13 = vadd.f32 %v751_v25, %v3218_v34  ;;  %v4523_v17 = vrot.slane %v3072_v55, 7  ;;  %v4527_v34 = vld [vmem:[#allocation41_spill] sm:$0xff]  ;;  %v4528_v25 = vrot.slane %v3168_v33, 7  ;;  %vm4535_vm0 = vmmov %vm4520_vm7 }
 0x20d   :  { %vm3674_vm9 = vcmp.lt.s32.totalorder %v4524_v40, 3  ;;  %v1094_v3 = vadd.f32 %v4527_v34, %v1073_v58  ;;  %v4529_v55 = vrot.slane %v3315_v49, 1  ;;  %v1273_v58 = vmul.f32 0.044715, %v1265_v48  ;;  %v4534_v34 = vld [vmem:[#allocation54_spill] sm:$0xff]  ;;  %vm3702_vm14 = vmand %vm4535_vm0, %vm3590_vm5  ;;  %v4561_v40 = vld [vmem:[#allocation56_spill] sm:$0xff] }
 0x20e   :  { %v494_v8 = vsel %vm491_vm2, %v4523_v17, %v488_v61  ;;  %v4329_v31 = vrot.slane %v3649_v16, 4  ;;  %v493_v32 = vsel %vm491_vm2, %v488_v61, %v4528_v25  ;;  %v4531_v17 = vand.u32 3, %v3318_v5  ;;  %v3706_v25 = vpop.eup %2220  ;;  %v4539_v5 = vld [vmem:[#allocation50_spill] sm:$0xff]  ;;  %vm4546_vm5 = vmmov %vm4541_vm1 }
 0x20f   :  { %v984_v22 = vsel %vm4530_vm10, %v4529_v55, %v4327_v63  ;;  %v616_v44 = vadd.f32 %v608_v43, %v4534_v34  ;;  %v4330_v6 = vrot.slane %v3658_v13, 4  ;;  %4538 = vst [vmem:[#allocation34_spill] sm:$0xff] %v3706_v25  ;;  %v4540_v55 = vrot.slane %v4539_v5, 4  ;;  %v4543_v34 = vld [vmem:[#allocation42_spill] sm:$0xff]  ;;  %v4544_v25 = vld [vmem:[#allocation52_spill] sm:$0xff]  ;;  %vm4554_vm11 = vmmov %vm4541_vm1 }
 0x210   :  { %vm3692_vm15 = vcmp.lt.s32.totalorder %v4531_v17, 3  ;;  %v505_v48 = vsel %vm3664_vm12, %v494_v8, 0.0  ;;  %v994_v53 = vsel %vm3601_vm13, %v984_v22, 0.0  ;;  %v931_v43 = vrot.slane %v921_v26, 7  ;;  %v4547_v8 = vld [vmem:[#allocation53_spill] sm:$0xff]  ;;  %vm4548_vm13 = vmmov %vm4474_vm6 }
 0x211   :  { %v687_v42 = vsel %vm4541_vm1, %v4540_v55, %v4329_v31  ;;  %v3718_v17 = vmul.f32 0.5, %v1241_v29  ;;  %v1181_v63 = vadd.f32 %v4543_v34, %v1160_v10  ;;  %v4545_v5 = vrot.slane %v4544_v25, 4  ;;  %vm4556_vm6 = vmmov %vm4541_vm1 }
 0x212   :  { %v3721_v28 = vadd.f32 %v687_v42, %v616_v44  ;;  %v3729_v31 = vadd.f32 %v1107_v37, %v1094_v3  ;;  %v506_v12 = vsel %vm3702_vm14, %v493_v32, 0.0  ;;  %v1002_v10 = vsel %vm4548_vm13, %v3315_v49, %v994_v53  ;;  %v971_v44 = vpop.permute.xlu1 %970  ;;  %vm3810_vm8 = vmand %vm426_vm4, %vm3692_vm15 }
 0x213   :  { %4542 = vst [vmem:[#allocation30_spill] sm:$0xff] %v3718_v17  ;;  %v774_v55 = vsel %vm4546_vm5, %v4545_v5, %v4330_v6  ;;  %v1281_v22 = vadd.f32 %v1273_v58, %v1241_v29  ;;  %v513_v42 = vsel %vm407_vm3, %v478_v35, %v505_v48  ;;  %v1104_v25 = vmul.f32 %v2942_v0, %v1002_v10  ;;  %vm4560_vm7 = vmmov %vm4530_vm10 }
 0x214   :  { %v790_v51 = vadd.f32 %v774_v55, %v4547_v8  ;;  %v1191_v34 = vmul.f32 %v4452_v27, %v1002_v10  ;;  %v1049_v3 = vmul.f32 %v4466_v62, %v1002_v10  ;;  %v4549_v32 = vrot.slane %v3519_v30, 7  ;;  %vm4573_vm15 = vmmov %vm4541_vm1 }
 0x215   :  { %v4550_v49 = vrot.slane %v3423_v18, 7  ;;  %v3754_v35 = vadd.f32 %v1104_v25, %v3616_v20  ;;  %v980_v48 = vrot.slane %v971_v44, 1  ;;  %v3760_v53 = vadd.f32 %v1194_v11, %v1181_v63  ;;  %vm4576_vm0 = vmmov %vm4541_vm1 }
 0x216   :  { %v3742_v37 = vadd.f32 %v3183_v60, %v790_v51  ;;  %v935_v5 = vsel %vm491_vm2, %v931_v43, %v4549_v32  ;;  %v3756_v58 = vadd.f32 %v1191_v34, %v1178_v24  ;;  %v3765_v55 = vsel %vm407_vm3, %v3168_v33, %v506_v12  ;;  %vm4579_vm1 = vmmov %vm4576_vm0 }
 0x217   :  { %v936_v29 = vsel %vm491_vm2, %v4550_v49, %v931_v43  ;;  %v575_v18 = vmul.f32 %v2859_v41, %v513_v42  ;;  %v948_v43 = vsel %vm3702_vm14, %v935_v5, 0.0  ;;  %v1289_v20 = vmul.f32 0.7978846, %v1281_v22  ;;  %vm3787_vm2 = vmand %vm426_vm4, %vm3674_vm9 }
 0x218   :  { %v947_v51 = vsel %vm3664_vm12, %v936_v29, 0.0  ;;  %v4332_v24 = vrot.slane %v3754_v35, 4  ;;  %v4331_v8 = vrot.slane %v3756_v58, 4  ;;  %v819_v63 = vmul.f32 %v3742_v37, %v3742_v37  ;;  %vm4564_vm12 = vmmov %vm4548_vm13 }
 0x219   :  { %v955_v39 = vsel %vm407_vm3, %v921_v26, %v947_v51  ;;  %v3777_v11 = vmul.f32 %v2861_v7, %v513_v42  ;;  %v3780_v33 = vmul.f32 %v2863_v50, %v513_v42  ;;  %v1057_v61 = vadd.f32 %v1049_v3, %v3612_v38  ;;  %v2223_v26 = vpop.eup %2222  ;;  %vm4565_vm9 = vmmov %vm4564_vm12 }
 0x21a   :  { %v4553_v10 = vrot.slane %v3486_v2, 4  ;;  %v4555_v38 = vrot.slane %v3488_v47, 4  ;;  %v956_v42 = vsel %vm407_vm3, %v3519_v30, %v948_v43  ;;  %v4559_v25 = vrot.slane %v3425_v59, 1  ;;  %vm4563_vm3 = vmmov %vm4560_vm7  ;;  %v4599_v2 = vld [vmem:[#allocation68_spill] sm:$0xff] }
 0x21b   :  { %v1016_v32 = vmul.f32 %v2859_v41, %v955_v39  ;;  %v1071_v30 = vmul.f32 %v2861_v7, %v955_v39  ;;  %2224 = vtanh.f32 %v1289_v20  ;;  %v3824_v5 = vadd.f32 %v4561_v40, %v575_v18  ;;  %vm4578_vm14 = vmmov %vm4576_vm0 }
 0x21c   :  { %v1127_v22 = vsel %vm4554_vm11, %v4553_v10, %v4332_v24  ;;  %v1214_v1 = vsel %vm4556_vm6, %v4555_v38, %v4331_v8  ;;  %v982_v47 = vsel %vm4560_vm7, %v980_v48, %v4559_v25  ;;  %v4562_v49 = vrot.slane %v3624_v57, 1  ;;  %v4566_v38 = vld [vmem:[#allocation60_spill] sm:$0xff]  ;;  %v4567_v25 = vld [vmem:[#allocation61_spill] sm:$0xff]  ;;  %vm4580_vm5 = vmmov %vm4576_vm0 }
 0x21d   :  { %v3818_v34 = vadd.f32 %v1127_v22, %v1057_v61  ;;  %v1230_v3 = vadd.f32 %v1214_v1, %v3525_v4  ;;  %v996_v29 = vsel %vm3787_vm2, %v982_v47, 0.0  ;;  %v1158_v4 = vmul.f32 %v2863_v50, %v955_v39  ;;  %vm4582_vm13 = vmmov %vm4576_vm0 }
 0x21e   :  { %v983_v59 = vsel %vm4563_vm3, %v4562_v49, %v980_v48  ;;  %vm443_vm4 = vcmp.ge.s32.totalorder %v2675_v36, 4  ;;  %v1004_v18 = vsel %vm4564_vm12, %v971_v44, %v996_v29  ;;  %v3841_v20 = vadd.f32 1.0, %v2223_v26  ;;  %v4568_v44 = vld [vmem:[#allocation63_spill] sm:$0xff]  ;;  %v4569_v49 = vld [vmem:[#allocation14_spill] sm:$0xff]  ;;  %vm4583_vm11 = vmmov %vm4576_vm0 }
 0x21f   :  { %v3833_v51 = vadd.f32 %v3183_v60, %v1230_v3  ;;  %v995_v43 = vsel %vm3810_vm8, %v983_v59, 0.0  ;;  %v1017_v61 = vmul.f32 %v2859_v41, %v956_v42  ;;  %v1051_v10 = vmul.f32 %v4466_v62, %v1004_v18  ;;  %vm4584_vm6 = vmmov %vm4576_vm0 }
 0x220   :  { %v1003_v48 = vsel %vm4565_vm9, %v3624_v57, %v995_v43  ;;  %v827_v39 = vmul.f32 %v819_v63, %v3742_v37  ;;  %v1037_v1 = vadd.f32 %v4566_v38, %v1016_v32  ;;  %v1092_v47 = vadd.f32 %v4567_v25, %v1071_v30  ;;  %v4570_v63 = vld [vmem:[#allocation62_spill] sm:$0xff]  ;;  %vm4593_vm7 = vmmov %vm4576_vm0 }
 0x221   :  { %v1259_v22 = vmul.f32 %v3833_v51, %v3833_v51  ;;  %v1038_v26 = vadd.f32 %v4568_v44, %v1017_v61  ;;  %v1050_v3 = vmul.f32 %v4466_v62, %v1003_v48  ;;  %v1072_v40 = vmul.f32 %v2861_v7, %v956_v42  ;;  %v4571_v61 = vld [vmem:[#allocation64_spill] sm:$0xff]  ;;  %vm4597_vm12 = vmmov %vm4563_vm3 }
 0x222   :  { %v1105_v57 = vmul.f32 %v2942_v0, %v1003_v48  ;;  %vm458_vm10 = vcmp.lt.s32.totalorder %v4569_v49, 60  ;;  %v1179_v29 = vadd.f32 %v4570_v63, %v1158_v4  ;;  %v1060_v43 = vadd.f32 %v3644_v14, %v3654_v46 }
 0x223   :  { %v1267_v59 = vmul.f32 %v1259_v22, %v3833_v51  ;;  %v1106_v32 = vmul.f32 %v2942_v0, %v1004_v18  ;;  %v1058_v30 = vadd.f32 %v1050_v3, %v1037_v1  ;;  %v1059_v38 = vadd.f32 %v1051_v10, %v1038_v26  ;;  %v4574_v1 = vld [vmem:[#allocation65_spill] sm:$0xff] }
 0x224   :  { %v1093_v25 = vadd.f32 %v4571_v61, %v1072_v40  ;;  %v1113_v62 = vadd.f32 %v1105_v57, %v1092_v47  ;;  %v1123_v6 = vrot.slane %v3729_v31, 4  ;;  %v1159_v8 = vmul.f32 %v2863_v50, %v956_v42 }
 0x225   :  { %v1275_v44 = vmul.f32 0.044715, %v1267_v59  ;;  %v1192_v24 = vmul.f32 %v4452_v27, %v1003_v48  ;;  %v1193_v4 = vmul.f32 %v4452_v27, %v1004_v18  ;;  %v1210_v46 = vrot.slane %v3760_v53, 4  ;;  %v2225_v26 = vpop.eup %2224 }
 0x226   :  { %v1114_v22 = vadd.f32 %v1106_v32, %v1093_v25  ;;  %v1121_v17 = vrot.slane %v1113_v62, 4  ;;  %v4572_v14 = vrot.slane %v3528_v54, 4  ;;  %v1180_v47 = vadd.f32 %v4574_v1, %v1159_v8 }
 0x227   :  { %v1283_v0 = vadd.f32 %v1275_v44, %v3833_v51  ;;  %v1200_v31 = vadd.f32 %v1192_v24, %v1179_v29  ;;  %v4575_v42 = vrot.slane %v3754_v35, 4  ;;  %v4577_v53 = vrot.slane %v3531_v19, 4 }
 0x228   :  { %v1131_v10 = vsel %vm4573_vm15, %v1123_v6, %v4572_v14  ;;  %v1122_v50 = vrot.slane %v1114_v22, 4  ;;  %v1201_v24 = vadd.f32 %v1193_v4, %v1180_v47  ;;  %v835_v40 = vmul.f32 0.044715, %v827_v39  ;;  %vm4598_vm15 = vmmov %vm4565_vm9 }
 0x229   :  { %v1126_v48 = vsel %vm4576_vm0, %v4575_v42, %v1121_v17  ;;  %v1132_v27 = vsel %vm443_vm4, %v1131_v10, 0.0  ;;  %v1218_v54 = vsel %vm4578_vm14, %v1210_v46, %v4577_v53  ;;  %v1291_v18 = vmul.f32 0.7978846, %v1283_v0  ;;  %vm4609_vm14 = vmmov %vm4576_vm0 }
 0x22a   :  { %v1140_v3 = vadd.f32 %v1132_v27, %v3609_v15  ;;  %v1145_v8 = vadd.f32 %v1126_v48, %v1058_v30  ;;  %v1124_v35 = vsel %vm4579_vm1, %v1122_v50, %v1123_v6  ;;  %v1125_v57 = vsel %vm4580_vm5, %v1121_v17, %v1122_v50  ;;  %v4587_v48 = vld [vmem:[#allocation66_spill] sm:$0xff]  ;;  %vm4611_vm1 = vmmov %vm4576_vm0 }
 0x22b   :  { %v1208_v59 = vrot.slane %v1200_v31, 4  ;;  %2226 = vtanh.f32 %v1291_v18  ;;  %v1146_v63 = vadd.f32 %v1125_v57, %v1059_v38  ;;  %v1147_v29 = vadd.f32 %v1124_v35, %v1060_v43  ;;  %v4589_v57 = vld [vmem:[#allocation67_spill] sm:$0xff] }
 0x22c   :  { %v1209_v19 = vrot.slane %v1201_v24, 4  ;;  %v4581_v32 = vrot.slane %v3756_v58, 4  ;;  %v1226_v15 = vsel %vm458_vm10, %v1218_v54, 0.0  ;;  %v1227_v39 = vadd.f32 %v3565_v23, %v1140_v3  ;;  %v4585_v23 = vld [vmem:[#allocation58_spill] sm:$0xff]  ;;  %v4588_v54 = vld [vmem:[#allocation37_spill] sm:$0xff]  ;;  %v529_v3 = vpop.permute.xlu0 %528 }
 0x22d   :  { %v3899_v6 = vadd.f32 %v3523_v9, %v3607_v56  ;;  %v1234_v30 = vadd.f32 %v1226_v15, %v1147_v29  ;;  %v843_v38 = vadd.f32 %v835_v40, %v3742_v37  ;;  %v3910_v22 = vadd.f32 %v4585_v23, %v3777_v11 }
 0x22e   :  { %v1213_v61 = vsel %vm4582_vm13, %v4581_v32, %v1208_v59  ;;  %v1211_v17 = vsel %vm4583_vm11, %v1209_v19, %v1210_v46  ;;  %v1212_v43 = vsel %vm4584_vm6, %v1208_v59, %v1209_v19  ;;  %v1240_v44 = vadd.f32 %v3183_v60, %v1227_v39  ;;  %v4586_v46 = vld [vmem:[#allocation59_spill] sm:$0xff] }
 0x22f   :  { %v1231_v58 = vadd.f32 %v1213_v61, %v3818_v34  ;;  %v1232_v25 = vadd.f32 %v1212_v43, %v1145_v8  ;;  %v1233_v62 = vadd.f32 %v1211_v17, %v1146_v63  ;;  %v3916_v56 = vadd.f32 %v3183_v60, %v1234_v30  ;;  %v2258_v19 = vld [vmem:[#allocation7 + $0xe] ss:$0 sm:$0xff] }
 0x230   :  { %v576_v34 = vmul.f32 %v2859_v41, %v3765_v55  ;;  %v3922_v4 = vmul.f32 %v3841_v20, %v3636_v21  ;;  %v3926_v0 = vadd.f32 %v4586_v46, %v3780_v33  ;;  %v3934_v10 = vadd.f32 1.0, %v2225_v26  ;;  %v4590_v61 = vld [vmem:[#allocation19_spill] sm:$0xff] }
 0x231   :  { %v3913_v9 = vadd.f32 %v3183_v60, %v1231_v58  ;;  %v3929_v11 = vadd.f32 %v3183_v60, %v1232_v25  ;;  %v3932_v14 = vadd.f32 %v3183_v60, %v1233_v62  ;;  %v1256_v1 = vmul.f32 %v1240_v44, %v1240_v44  ;;  %v4591_v62 = vld [vmem:[#allocation48_spill] sm:$0xff] }
 0x232   :  { %v631_v21 = vmul.f32 %v2861_v7, %v3765_v55  ;;  %v3940_v20 = vmul.f32 0.7978846, %v843_v38  ;;  %v3943_v33 = vmul.f32 0.5, %v3833_v51  ;;  %v1263_v26 = vmul.f32 %v3916_v56, %v3916_v56 }
 0x233   :  { %v1260_v41 = vmul.f32 %v3913_v9, %v3913_v9  ;;  %v1261_v47 = vmul.f32 %v3929_v11, %v3929_v11  ;;  %v1262_v31 = vmul.f32 %v3932_v14, %v3932_v14  ;;  %v1264_v50 = vmul.f32 %v1256_v1, %v1240_v44 }
 0x234   :  { %v597_v27 = vadd.f32 %v4587_v48, %v576_v34  ;;  %v3953_v7 = vmul.f32 0.5, %v1240_v44  ;;  %v682_v18 = vrot.slane %v4588_v54, 4  ;;  %v1271_v24 = vmul.f32 %v1263_v26, %v3916_v56 }
 0x235   :  { %v1268_v42 = vmul.f32 %v1260_v41, %v3913_v9  ;;  %v1269_v53 = vmul.f32 %v1261_v47, %v3929_v11  ;;  %v1270_v51 = vmul.f32 %v1262_v31, %v3932_v14  ;;  %v2227_v8 = vpop.eup %2226  ;;  %v1272_v40 = vmul.f32 0.044715, %v1264_v50  ;;  %v4594_v41 = vld [vmem:[#allocation46_spill] sm:$0xff] }
 0x236   :  { %v652_v59 = vadd.f32 %v4589_v57, %v631_v21  ;;  %v719_v32 = vmul.f32 %v2258_v19, %v3765_v55  ;;  %v770_v15 = vrot.slane %v4590_v61, 4  ;;  %v1279_v39 = vmul.f32 0.044715, %v1271_v24 }
 0x237   :  { %v1276_v35 = vmul.f32 0.044715, %v1268_v42  ;;  %v1277_v63 = vmul.f32 0.044715, %v1269_v53  ;;  %v1278_v29 = vmul.f32 0.044715, %v1270_v51  ;;  %v1280_v17 = vadd.f32 %v1272_v40, %v1240_v44 }
 0x238   :  { %v538_v58 = vrot.slane %v529_v3, 1  ;;  %v3963_v30 = vadd.f32 1.0, %v2227_v8  ;;  %v4592_v23 = vrot.slane %v4591_v62, 4  ;;  %v1287_v55 = vadd.f32 %v1279_v39, %v3916_v56  ;;  %v2259_v8 = vld [vmem:[#allocation7 + $0xd] ss:$0 sm:$0xff] }
 0x239   :  { %v1284_v43 = vadd.f32 %v1276_v35, %v3913_v9  ;;  %v1285_v38 = vadd.f32 %v1277_v63, %v3929_v11  ;;  %v1286_v25 = vadd.f32 %v1278_v29, %v3932_v14  ;;  %v1288_v46 = vmul.f32 0.7978846, %v1280_v17  ;;  %v2260_v40 = vld [vmem:[#allocation7 + $0xa] ss:$0 sm:$0xff] }
 0x23a   :  { %v691_v34 = vsel %vm4593_vm7, %v682_v18, %v4592_v23  ;;  %v4595_v44 = vrot.slane %v4594_v41, 1  ;;  %v4596_v26 = vrot.slane %v3553_v52, 1  ;;  %v1295_v48 = vmul.f32 0.7978846, %v1287_v55 }
 0x23b   :  { %v1292_v1 = vmul.f32 0.7978846, %v1284_v43  ;;  %v1293_v47 = vmul.f32 0.7978846, %v1285_v38  ;;  %v1294_v31 = vmul.f32 0.7978846, %v1286_v25  ;;  %2228 = vtanh.f32 %v1288_v46 }
 0x23c   :  { %v541_v21 = vsel %vm4563_vm3, %v538_v58, %v4595_v44  ;;  %v542_v50 = vsel %vm4597_vm12, %v4596_v26, %v538_v58  ;;  %v692_v63 = vsel %vm443_vm4, %v691_v34, 0.0  ;;  %v740_v29 = vadd.f32 %v4599_v2, %v719_v32  ;;  %v1343_v58 = vld [vmem:[%s4281_s2] sm:$0xff]  ;;  %v1344_v38 = vld [vmem:[%s4281_s2 + $0x8] sm:$0xff]  ;;  %vm4606_vm4 = vmmov %vm4576_vm0 }
 0x23d   :  { %v555_v42 = vsel %vm3787_vm2, %v541_v21, 0.0  ;;  %v554_v53 = vsel %vm3810_vm8, %v542_v50, 0.0  ;;  %2230 = vtanh.f32 %v1292_v1  ;;  %v4601_v32 = vld [vmem:[#allocation49_spill] sm:$0xff]  ;;  %vm4603_vm2 = vmmov %vm4576_vm0  ;;  %v2342_v21 = vmov 0.0|0.0  }
 0x23e   :  { %v563_v51 = vsel %vm4565_vm9, %v529_v3, %v555_v42  ;;  %v562_v54 = vsel %vm4598_vm15, %v3553_v52, %v554_v53  ;;  %2232 = vtanh.f32 %v1293_v47  ;;  %v4600_v3 = vld [vmem:[#allocation47_spill] sm:$0xff]  ;;  %v2261_v52 = vld [vmem:[#allocation7 + $0x10] ss:$0 sm:$0xff]  ;;  %vm4605_vm8 = vmmov %vm4576_vm0  ;;  %2118 = vmatprep.subr.bf16.mxu1 %v2342_v21  ;;  %v2119_v47 = vpack.c.bf16 %v1344_v38, %v1343_v58 }
 0x23f   :  { %v610_v24 = vmul.f32 %v2259_v8, %v563_v51  ;;  %v665_v35 = vmul.f32 %v2260_v40, %v563_v51  ;;  %v609_v12 = vmul.f32 %v2259_v8, %v562_v54  ;;  %v664_v57 = vmul.f32 %v2260_v40, %v562_v54 }
 0x240   :  { %2234 = vtanh.f32 %v1294_v31  ;;  %v700_v39 = vadd.f32 %v692_v63, %v4600_v3  ;;  %v752_v43 = vmul.f32 %v2261_v52, %v562_v54  ;;  %v753_v62 = vmul.f32 %v2261_v52, %v563_v51  ;;  %v1345_v31 = vld [vmem:[%s4281_s2 + $0x10] sm:$0xff]  ;;  %2120 = vmatpush3.bf16.msra.mxu1 %v2119_v47 }
 0x241   :  { %v673_v19 = vadd.f32 %v665_v35, %v652_v59  ;;  %2236 = vtanh.f32 %v1295_v48  ;;  %v618_v17 = vadd.f32 %v610_v24, %v597_v27  ;;  %v672_v45 = vadd.f32 %v664_v57, %v3910_v22  ;;  %v4604_v22 = vld [vmem:[#allocation51_spill] sm:$0xff]  ;;  %2121 = vmatprep.subr.bf16.mxu1 %v2342_v21 }
 0x242   :  { %v4602_v59 = vrot.slane %v4601_v32, 4  ;;  %v787_v23 = vadd.f32 %v4604_v22, %v700_v39  ;;  %v617_v34 = vadd.f32 %v609_v12, %v3824_v5  ;;  %v760_v46 = vadd.f32 %v752_v43, %v3926_v0  ;;  %v1346_v5 = vld [vmem:[%s4281_s2 + $0x18] sm:$0xff] }
 0x243   :  { %v681_v25 = vrot.slane %v673_v19, 4  ;;  %v680_v55 = vrot.slane %v672_v45, 4  ;;  %v761_v41 = vadd.f32 %v753_v62, %v740_v29  ;;  %v4608_v24 = vrot.slane %v3658_v13, 4  ;;  %v4612_v29 = vld [vmem:[#allocation30_spill] sm:$0xff] }
 0x244   :  { %v778_v27 = vsel %vm4603_vm2, %v770_v15, %v4602_v59  ;;  %v4012_v44 = vadd.f32 %v3183_v60, %v787_v23  ;;  %v768_v42 = vrot.slane %v760_v46, 4  ;;  %v4046_v19 = vmul.f32 %v3934_v10, %v4612_v29  ;;  %v1349_v23 = vld [vmem:[%s4281_s2 + $0x30] sm:$0xff] }
 0x245   :  { %v684_v1 = vsel %vm4605_vm8, %v681_v25, %v682_v18  ;;  %v685_v0 = vsel %vm4606_vm4, %v680_v55, %v681_v25  ;;  %v4607_v18 = vrot.slane %v3649_v16, 4  ;;  %v769_v51 = vrot.slane %v761_v41, 4  ;;  %v2229_v8 = vpop.eup %2228  ;;  %v1347_v25 = vld [vmem:[%s4281_s2 + $0x20] sm:$0xff] }
 0x246   :  { %v707_v50 = vadd.f32 %v684_v1, %v3899_v6  ;;  %v706_v53 = vadd.f32 %v685_v0, %v618_v17  ;;  %v786_v54 = vsel %vm458_vm10, %v778_v27, 0.0  ;;  %v773_v40 = vsel %vm4609_vm14, %v4608_v24, %v768_v42  ;;  %vm4610_vm10 = vmmov %vm4576_vm0 }
 0x247   :  { %v686_v26 = vsel %vm4576_vm0, %v4607_v18, %v680_v55  ;;  %v816_v35 = vmul.f32 %v4012_v44, %v4012_v44  ;;  %v2122_v6 = vpack.c.bf16 %v1346_v5, %v1345_v31  ;;  %v2231_v12 = vpop.eup %2230  ;;  %v1304_v57 = vadd.f32 1.0, %v2229_v8 }
 0x248   :  { %v705_v48 = vadd.f32 %v686_v26, %v617_v34  ;;  %v794_v16 = vadd.f32 %v786_v54, %v707_v50  ;;  %v771_v49 = vsel %vm4610_vm10, %v769_v51, %v770_v15  ;;  %v772_v13 = vsel %vm4611_vm1, %v768_v42, %v769_v51  ;;  %v2233_v2 = vpop.eup %2232  ;;  %v1351_v50 = vld [vmem:[%s4281_s2 + $0x40] sm:$0xff]  ;;  %v1352_v42 = vld [vmem:[%s4281_s2 + $0x48] sm:$0xff] }
 0x249   :  { %v791_v63 = vadd.f32 %v773_v40, %v3721_v28  ;;  %v1308_v3 = vadd.f32 1.0, %v2231_v12  ;;  %v793_v17 = vadd.f32 %v771_v49, %v706_v53  ;;  %2238 = vtanh.f32 %v3940_v20  ;;  %2123 = vmatpush3.bf16.msra.mxu1 %v2122_v6 }
 0x24a   :  { %v792_v39 = vadd.f32 %v772_v13, %v705_v48  ;;  %v2235_v45 = vpop.eup %2234  ;;  %v1252_v61 = vmul.f32 0.5, %v3913_v9  ;;  %v4051_v15 = vmul.f32 %v1304_v57, %v3953_v7  ;;  %v4063_v43 = vadd.f32 %v3183_v60, %v794_v16  ;;  %2124 = vmatprep.subr.bf16.mxu1 %v2342_v21 }
 0x24b   :  { %v4054_v36 = vadd.f32 %v3183_v60, %v791_v63  ;;  %v2237_v28 = vpop.eup %2236  ;;  %v4060_v10 = vadd.f32 %v3183_v60, %v793_v17  ;;  %v824_v20 = vmul.f32 %v816_v35, %v4012_v44  ;;  %v4069_v9 = vmul.f32 %v3963_v30, %v3943_v33  ;;  %v1354_v17 = vld [vmem:[%s4281_s2 + $0x58] sm:$0xff] }
 0x24c   :  { %v4057_v52 = vadd.f32 %v3183_v60, %v792_v39  ;;  %v1255_v7 = vmul.f32 0.5, %v3916_v56  ;;  %v1309_v58 = vadd.f32 1.0, %v2233_v2  ;;  %v1328_v38 = vadd.f32 %v4046_v19, %v4051_v15  ;;  %v1348_v60 = vld [vmem:[%s4281_s2 + $0x28] sm:$0xff]  ;;  %v1353_v2 = vld [vmem:[%s4281_s2 + $0x50] sm:$0xff] }
 0x24d   :  { %v1253_v62 = vmul.f32 0.5, %v3929_v11  ;;  %v1254_v32 = vmul.f32 0.5, %v3932_v14  ;;  %v1310_v33 = vadd.f32 1.0, %v2235_v45  ;;  %v4082_v30 = vmul.f32 %v1308_v3, %v1252_v61  ;;  %v1350_v11 = vld [vmem:[%s4281_s2 + $0x38] sm:$0xff] }
 0x24e   :  { %v1311_v56 = vadd.f32 1.0, %v2237_v28  ;;  %v1329_v59 = vadd.f32 %v1328_v38, %v3922_v4  ;;  %v820_v27 = vmul.f32 %v4054_v36, %v4054_v36  ;;  %v821_v22 = vmul.f32 %v4057_v52, %v4057_v52  ;;  %v1355_v38 = vld [vmem:[%s4281_s2 + $0x60] sm:$0xff] }
 0x24f   :  { %v822_v14 = vmul.f32 %v4060_v10, %v4060_v10  ;;  %v823_v34 = vmul.f32 %v4063_v43, %v4063_v43  ;;  %v832_v55 = vmul.f32 0.044715, %v824_v20  ;;  %v2125_v46 = vpack.c.bf16 %v1348_v60, %v1347_v25  ;;  %v1356_v25 = vld [vmem:[%s4281_s2 + $0x68] sm:$0xff] }
 0x250   :  { %v4099_v1 = vmul.f32 %v1309_v58, %v1253_v62  ;;  %v1330_v41 = vadd.f32 %v1329_v59, %v4069_v9  ;;  %v828_v47 = vmul.f32 %v820_v27, %v4054_v36  ;;  %v829_v31 = vmul.f32 %v821_v22, %v4057_v52  ;;  %v1357_v59 = vld [vmem:[%s4281_s2 + $0x70] sm:$0xff]  ;;  %v1358_v27 = vld [vmem:[%s4281_s2 + $0x78] sm:$0xff] }
 0x251   :  { %v830_v5 = vmul.f32 %v822_v14, %v4060_v10  ;;  %v831_v0 = vmul.f32 %v823_v34, %v4063_v43  ;;  %v840_v18 = vadd.f32 %v832_v55, %v4012_v44  ;;  %2126 = vmatpush3.bf16.msra.mxu1 %v2125_v46  ;;  %v2128_v26 = vpack.c.bf16 %v1350_v11, %v1349_v23  ;;  %v4614_v23 = vld [vmem:[#allocation34_spill] sm:$0xff]  ;;  %v4615_v34 = vld [vmem:[#allocation55_spill] sm:$0xff] }
 0x252   :  { %v4113_v48 = vmul.f32 %v1310_v33, %v1254_v32  ;;  %v1331_v53 = vadd.f32 %v1330_v41, %v4082_v30  ;;  %v836_v51 = vmul.f32 0.044715, %v828_v47  ;;  %v837_v54 = vmul.f32 0.044715, %v829_v31  ;;  %2127 = vmatprep.subr.bf16.mxu1 %v2342_v21  ;;  %v4613_v32 = vld [vmem:[#allocation20_spill] sm:$0xff]  ;;  %v4616_v31 = vld [vmem:[#allocation57_spill] sm:$0xff] }
 0x253   :  { %v4117_v8 = vmul.f32 %v1311_v56, %v1255_v7  ;;  %v838_v24 = vmul.f32 0.044715, %v830_v5  ;;  %v839_v40 = vmul.f32 0.044715, %v831_v0  ;;  %v848_v16 = vmul.f32 0.7978846, %v840_v18  ;;  %v2239_v35 = vpop.eup %2238 }
 0x254   :  { %v1332_v6 = vadd.f32 %v1331_v53, %v4099_v1  ;;  %v844_v12 = vadd.f32 %v836_v51, %v4054_v36  ;;  %v845_v57 = vadd.f32 %v837_v54, %v4057_v52  ;;  %v2131_v49 = vpack.c.bf16 %v1352_v42, %v1351_v50 }
 0x255   :  { %v846_v13 = vadd.f32 %v838_v24, %v4060_v10  ;;  %v847_v63 = vadd.f32 %v839_v40, %v4063_v43  ;;  %2240 = vtanh.f32 %v848_v16  ;;  %2129 = vmatpush3.bf16.msra.mxu1 %v2128_v26  ;;  %vm2343_vm5 = vmmov 0  }
 0x256   :  { %v1333_v29 = vadd.f32 %v1332_v6, %v4113_v48  ;;  %v852_v3 = vmul.f32 0.7978846, %v844_v12  ;;  %v853_v39 = vmul.f32 0.7978846, %v845_v57  ;;  %2130 = vmatprep.subr.bf16.mxu1 %v2342_v21  ;;  %v2344_v61 = vmov 0.0  }
 0x257   :  { %v854_v45 = vmul.f32 0.7978846, %v846_v13  ;;  %2022 = vmatprep.mubr.msk.f32.mxu1 %vm2343_vm5, %v2344_v61  ;;  %2025 = vmatprep.subr.mxu0 %v2344_v61  ;;  %v855_v20 = vmul.f32 0.7978846, %v847_v63  ;;  %v2134_v7 = vpack.c.bf16 %v1354_v17, %v1353_v2  ;;  %v2137_v62 = vpack.c.bf16 %v1356_v25, %v1355_v38 }
 0x258   :  { %v1334_v28 = vadd.f32 %v1333_v29, %v4117_v8  ;;  %2242 = vtanh.f32 %v852_v3  ;;  %2027 = vmatprep.mubr.msk.f32.mxu0 %vm2343_vm5, %v2344_v61  ;;  %v865_v33 = vadd.f32 1.0, %v4613_v32  ;;  %v866_v11 = vadd.f32 1.0, %v4614_v23  ;;  %v1592_v23 = vld [vmem:[#allocation4 + $0x8] sm:$0xff] }
 0x259   :  { %2244 = vtanh.f32 %v853_v39  ;;  %2132 = vmatpush3.bf16.msra.mxu1 %v2131_v49  ;;  %v867_v14 = vadd.f32 1.0, %v2239_v35  ;;  %v809_v55 = vmul.f32 0.5, %v4615_v34  ;;  %v808_v41 = vmul.f32 0.5, %v4012_v44  ;;  %v1594_v34 = vld [vmem:[#allocation4 + $0x28] sm:$0xff] }
 0x25a   :  { %v1335_v58 = vrot.slane %v1334_v28, 4  ;;  %2133 = vmatprep.subr.bf16.mxu1 %v2342_v21  ;;  %2246 = vtanh.f32 %v854_v45  ;;  %v810_v5 = vmul.f32 0.5, %v4616_v31  ;;  %v811_v0 = vmul.f32 0.5, %v3742_v37 }
 0x25b   :  { %2248 = vtanh.f32 %v855_v20  ;;  %v2140_v18 = vpack.c.bf16 %v1358_v27, %v1357_v59  ;;  %v4153_v50 = vmul.f32 %v865_v33, %v809_v55  ;;  %v812_v16 = vmul.f32 0.5, %v4054_v36  ;;  %v1595_v55 = vld [vmem:[#allocation4 + $0x38] sm:$0xff] }
 0x25c   :  { %v1336_v60 = vadd.f32 %v1335_v58, %v1334_v28  ;;  %v4158_v54 = vmul.f32 %v866_v11, %v810_v5  ;;  %v4160_v24 = vmul.f32 %v867_v14, %v811_v0  ;;  %v813_v12 = vmul.f32 0.5, %v4057_v52  ;;  %v1593_v11 = vld [vmem:[#allocation4 + $0x18] sm:$0xff]  ;;  %v1598_v5 = vld [vmem:[#allocation4 + $0x68] sm:$0xff] }
 0x25d   :  { %2135 = vmatpush3.bf16.msra.mxu1 %v2134_v7  ;;  %v814_v36 = vmul.f32 0.5, %v4060_v10  ;;  %v815_v39 = vmul.f32 0.5, %v4063_v43  ;;  %v1436_v43 = vld [vmem:[#allocation7] sm:$0xff]  ;;  %vm1437_vm13 = vcmask 64512   ;;  %v2142_v14 = vpack.c.bf16 %v1593_v11, %v1592_v23  ;;  %v1599_v0 = vld [vmem:[#allocation4 + $0x78] sm:$0xff] }
 0x25e   :  { %v1337_v56 = vrot.slane %v1336_v60, 2  ;;  %2136 = vmatprep.subr.bf16.mxu1 %v2342_v21  ;;  %2026 = vmatpush3.msra.mxu0 %v1436_v43 }
 0x25f   :  { %v2241_v22 = vpop.eup %2240  ;;  %2143 = vmatprep.subr.bf16.mxu0 %v2142_v14 }
 0x260   :  { %v1338_v46 = vadd.f32 %v1337_v56, %v1336_v60  ;;  %v864_v47 = vadd.f32 1.0, %v2241_v22 }
 0x261   :  { %2138 = vmatpush3.bf16.msra.mxu1 %v2137_v62 }
 0x262   :  { %v2243_v26 = vpop.eup %2242  ;;  %v1339_v42 = vrot.slane %v1338_v46, 1  ;;  %v4155_v53 = vmul.f32 %v864_v47, %v808_v41  ;;  %2139 = vmatprep.subr.bf16.mxu1 %v2342_v21  ;;  %v2146_v41 = vpack.c.bf16 %v1595_v55, %v1594_v34  ;;  %v1597_v47 = vld [vmem:[#allocation4 + $0x58] sm:$0xff] }
 0x263   :  { %v2245_v51 = vpop.eup %2244  ;;  %v868_v44 = vadd.f32 1.0, %v2243_v26  ;;  %v1600_v26 = vld [vmem:[#allocation4 + $0x88] sm:$0xff] }
 0x264   :  { %v1340_v40 = vadd.f32 %v1339_v42, %v1338_v46  ;;  %v869_v37 = vadd.f32 1.0, %v2245_v51  ;;  %v888_v35 = vadd.f32 %v4153_v50, %v4155_v53  ;;  %v2247_v6 = vpop.eup %2246  ;;  %v1596_v46 = vld [vmem:[#allocation4 + $0x48] sm:$0xff]  ;;  %v1601_v42 = vld [vmem:[#allocation4 + $0x98] sm:$0xff] }
 0x265   :  { %2141 = vmatpush3.bf16.msra.mxu1 %v2140_v18  ;;  %v4166_v57 = vmul.f32 %v868_v44, %v812_v16  ;;  %v2249_v49 = vpop.eup %2248  ;;  %v870_v13 = vadd.f32 1.0, %v2247_v6  ;;  %v2150_v31 = vpack.c.bf16 %v1597_v47, %v1596_v46  ;;  %v2154_v18 = vpack.c.bf16 %v1599_v0, %v1598_v5  ;;  %v1602_v44 = vld [vmem:[#allocation4 + $0xa8] sm:$0xff]  ;;  %v1762_v46 = vld [vmem:[%s4279_s0 + $0x20] sm:$0xff]  ;;  %v1765_v0 = vld [vmem:[%s4279_s0 + $0x38] sm:$0xff] }
 0x266   :  { %1341 = vst [vmem:[#allocation3 + $0x1] sm:$0x1] %v1340_v40  ;;  %v889_v21 = vadd.f32 %v888_v35, %v4158_v54  ;;  %v4169_v63 = vmul.f32 %v869_v37, %v813_v12  ;;  %v871_v29 = vadd.f32 1.0, %v2249_v49  ;;  %v2158_v51 = vpack.c.bf16 %v1601_v42, %v1600_v26  ;;  %v1603_v40 = vld [vmem:[#allocation4 + $0xb8] sm:$0xff]  ;;  %v1604_v37 = vld [vmem:[#allocation4 + $0xc8] sm:$0xff] }
 0x267   :  { %v4175_v17 = vmul.f32 %v870_v13, %v814_v36  ;;  %v2162_v16 = vpack.c.bf16 %v1603_v40, %v1602_v44  ;;  %v1605_v35 = vld [vmem:[#allocation4 + $0xd8] sm:$0xff]  ;;  %v1606_v12 = vld [vmem:[#allocation4 + $0xe8] sm:$0xff] }
 0x268   :  { %v890_v2 = vadd.f32 %v889_v21, %v4160_v24  ;;  %v4178_v45 = vmul.f32 %v871_v29, %v815_v39  ;;  %v2166_v6 = vpack.c.bf16 %v1605_v35, %v1604_v37  ;;  %v1607_v21 = vld [vmem:[#allocation4 + $0xf8] sm:$0xff]  ;;  %v1764_v42 = vld [vmem:[%s4279_s0 + $0x30] sm:$0xff]  ;;  %v1767_v37 = vld [vmem:[%s4279_s0 + $0x48] sm:$0xff] }
 0x269   :  { %v2170_v49 = vpack.c.bf16 %v1607_v21, %v1606_v12  ;;  %v1766_v12 = vld [vmem:[%s4279_s0 + $0x40] sm:$0xff] }
 0x26a   :  { %v891_v3 = vadd.f32 %v890_v2, %v4166_v57 }
 0x26c   :  { %v892_v52 = vadd.f32 %v891_v3, %v4169_v63 }
 0x26e   :  { %v893_v61 = vadd.f32 %v892_v52, %v4175_v17 }
 0x270   :  { %v894_v28 = vadd.f32 %v893_v61, %v4178_v45 }
 0x272   :  { %v895_v20 = vrot.slane %v894_v28, 4 }
 0x274   :  { %v896_v7 = vadd.f32 %v895_v20, %v894_v28 }
 0x276   :  { %v897_v58 = vrot.slane %v896_v7, 2 }
 0x278   :  { %v898_v38 = vadd.f32 %v897_v58, %v896_v7 }
 0x27a   :  { %v899_v10 = vrot.slane %v898_v38, 1 }
 0x27c   :  { %v900_v25 = vadd.f32 %v899_v10, %v898_v38 }
 0x27e   :  { %901 = vst [vmem:[#allocation3] sm:$0x1] %v900_v25 }
 0x285   :  { %v1342_v60 = vld [vmem:[#allocation3] sm:$0x3] }
 0x286   :  { %2023 = vmatmul.mubr.f32.vlgmr.msra.gmra.mrb[16].mxu1 %v1342_v60 }
 0x359   :  { %v1425_v62 = vpop.f32.mrb[16].mxu1 }
 0x35a   :  { %v1845_v32 = vmul.f32 -1.442695, %v1425_v62  ;;  %v2024_v33 = vpop.f32.mrb[17].mxu1 }
 0x35c   :  { %2250 = vpow2.f32 %v1845_v32  ;;  %v1761_v32 = vld [vmem:[%s4279_s0 + $0x18] sm:$0xff] }
 0x366   :  { %v2251_v56 = vpop.eup %2250 }
 0x367   :  { %v1432_v59 = vadd.f32 1.0, %v2251_v56 }
 0x369   :  { %2252 = vrcp.f32 %v1432_v59  ;;  %v1760_v59 = vld [vmem:[%s4279_s0 + $0x10] sm:$0xff] }
 0x373   :  { %v2253_v27 = vpop.eup %2252 }
 0x374   :  { %v1435_v22 = vmul.f32 %v2253_v27, %v1425_v62 }
 0x376   :  { %2028 = vmatmul.mubr.msk.f32.vlgmr.msra.gmra.mrb[0].mxu0 %vm1437_vm13, %v1435_v22 }
 0x377   :  { %2145 = vmatpush3.bf16.msra.mxu0 %v2142_v14  ;;  %v1763_v14 = vld [vmem:[%s4279_s0 + $0x28] sm:$0xff] }
 0x378   :  { %2147 = vmatprep.subr.bf16.mxu0 %v2146_v41 }
 0x37b   :  { %2149 = vmatpush3.bf16.msra.mxu0 %v2146_v41 }
 0x37c   :  { %2151 = vmatprep.subr.bf16.mxu0 %v2150_v31 }
 0x37f   :  { %2153 = vmatpush3.bf16.msra.mxu0 %v2150_v31 }
 0x380   :  { %2155 = vmatprep.subr.bf16.mxu0 %v2154_v18 }
 0x383   :  { %2157 = vmatpush3.bf16.msra.mxu0 %v2154_v18 }
 0x384   :  { %2159 = vmatprep.subr.bf16.mxu0 %v2158_v51 }
 0x387   :  { %2161 = vmatpush3.bf16.msra.mxu0 %v2158_v51 }
 0x388   :  { %2163 = vmatprep.subr.bf16.mxu0 %v2162_v16 }
 0x38b   :  { %2165 = vmatpush3.bf16.msra.mxu0 %v2162_v16 }
 0x38c   :  { %2167 = vmatprep.subr.bf16.mxu0 %v2166_v6 }
 0x38f   :  { %2169 = vmatpush3.bf16.msra.mxu0 %v2166_v6 }
 0x390   :  { %2171 = vmatprep.subr.bf16.mxu0 %v2170_v49 }
 0x393   :  { %2173 = vmatpush3.bf16.msra.mxu0 %v2170_v49 }
 0x449   :  { %v1507_v13 = vpop.f32.mrb[0].mxu0 }
 0x44a   :  { %v1847_v2 = vmul.f32 -1.442695, %v1507_v13  ;;  %v2029_v36 = vpop.f32.mrb[1].mxu0 }
 0x44b   :  { %v1769_v36 = vld [vmem:[%s4279_s0 + $0x58] sm:$0xff] }
 0x44c   :  { %2254 = vpow2.f32 %v1847_v2 }
 0x456   :  { %v2255_v29 = vpop.eup %2254 }
 0x457   :  { %v1514_v3 = vadd.f32 1.0, %v2255_v29 }
 0x459   :  { %2256 = vrcp.f32 %v1514_v3 }
 0x463   :  { %v2257_v39 = vpop.eup %2256 }
 0x464   :  { %1517 = vst [vmem:[#allocation3] sm:$0x3] %v2257_v39  ;;  %v1768_v39 = vld [vmem:[%s4279_s0 + $0x50] sm:$0xff] }
 0x46b   :  { %v1848_v52 = vld [vmem:[#allocation3] ss:$0 sm:$0xff]  ;;  %v1849_v25 = vld [vmem:[#allocation3 + $0x1] ss:$0 sm:$0xff] }
 0x46c   :  { %v1531_v61 = vmul.f32 %v1848_v52, %v4155_v53  ;;  %v1532_v28 = vmul.f32 %v1848_v52, %v4153_v50  ;;  %v1533_v20 = vmul.f32 %v1848_v52, %v4158_v54  ;;  %v1534_v7 = vmul.f32 %v1848_v52, %v4160_v24 }
 0x46d   :  { %v1535_v58 = vmul.f32 %v1848_v52, %v4166_v57  ;;  %v1536_v38 = vmul.f32 %v1848_v52, %v4169_v63  ;;  %v1537_v10 = vmul.f32 %v1848_v52, %v4175_v17  ;;  %v1538_v50 = vmul.f32 %v1848_v52, %v4178_v45 }
 0x46e   :  { %2062 = vmatprep.mubr.f32.mxu0 %v1531_v61  ;;  %v1560_v53 = vmul.f32 %v1849_v25, %v4051_v15  ;;  %v1561_v54 = vmul.f32 %v1849_v25, %v4046_v19  ;;  %v1562_v24 = vmul.f32 %v1849_v25, %v3922_v4  ;;  %v1563_v57 = vmul.f32 %v1849_v25, %v4069_v9  ;;  %v4198_v19 = vld [vmem:[#allocation7 + $0x13] ss:$0 sm:$0xff]  ;;  %v1759_v9 = vld [vmem:[%s4279_s0 + $0x8] sm:$0xff] }
 0x46f   :  { %2063 = vmatmul.mubr.f32.vlgmr.msra.gmra.mrb[2].mxu0 %v1532_v28  ;;  %v1564_v63 = vmul.f32 %v1849_v25, %v4082_v30  ;;  %v1565_v17 = vmul.f32 %v1849_v25, %v4099_v1  ;;  %v1566_v45 = vmul.f32 %v1849_v25, %v4113_v48  ;;  %v1567_v15 = vmul.f32 %v1849_v25, %v4117_v8  ;;  %v1758_v1 = vld [vmem:[%s4279_s0] sm:$0xff] }
 0x470   :  { %2065 = vmatprep.mubr.f32.mxu0 %v1533_v20 }
 0x473   :  { %2066 = vmatmul.mubr.f32.gmra.mrb[4].mxu0 %v1534_v7  ;;  %v1771_v7 = vld [vmem:[%s4279_s0 + $0x68] sm:$0xff] }
 0x474   :  { %2068 = vmatprep.mubr.f32.mxu0 %v1535_v58 }
 0x477   :  { %2069 = vmatmul.mubr.f32.gmra.mrb[6].mxu0 %v1536_v38 }
 0x478   :  { %2071 = vmatprep.mubr.f32.mxu0 %v1537_v10  ;;  %v1770_v10 = vld [vmem:[%s4279_s0 + $0x60] sm:$0xff] }
 0x47b   :  { %2072 = vmatmul.mubr.f32.gmra.mrb[8].mxu0 %v1538_v50 }
 0x47c   :  { %2074 = vmatprep.mubr.f32.mxu0 %v1560_v53 }
 0x47f   :  { %2075 = vmatmul.mubr.f32.gmra.mrb[10].mxu0 %v1561_v54 }
 0x480   :  { %2077 = vmatprep.mubr.f32.mxu0 %v1562_v24  ;;  %v1773_v24 = vld [vmem:[%s4279_s0 + $0x78] sm:$0xff] }
 0x483   :  { %2078 = vmatmul.mubr.f32.gmra.mrb[12].mxu0 %v1563_v57 }
 0x484   :  { %2080 = vmatprep.mubr.f32.mxu0 %v1564_v63 }
 0x487   :  { %2081 = vmatmul.mubr.f32.gmra.mrb[14].mxu0 %v1565_v17  ;;  %v1772_v17 = vld [vmem:[%s4279_s0 + $0x70] sm:$0xff] }
 0x488   :  { %2083 = vmatprep.mubr.f32.mxu0 %v1566_v45 }
 0x48b   :  { %2084 = vmatmul.mubr.f32.gmra.mrb[16].mxu0 %v1567_v15 }
 0x542   :  { %v2064_v4 = vpop.f32.mrb[2].mxu0 }
 0x543   :  { %v1685_v30 = vadd.f32 %v2064_v4, %v4198_v19  ;;  %v1679_v60 = vpop.f32.mrb[3].mxu0 }
 0x544   :  { %v1680_v48 = vadd.f32 %v4198_v19, %v1679_v60 }
 0x545   :  { %v1775_v43 = vadd.f32 %v1759_v9, %v1685_v30 }
 0x546   :  { %v1774_v62 = vadd.f32 %v1758_v1, %v1680_v48  ;;  %v2067_v8 = vpop.f32.mrb[4].mxu0 }
 0x547   :  { %1791 = vst [vmem:[#allocation9 + $0x8] sm:$0xff] %v1775_v43  ;;  %v1695_v33 = vadd.f32 %v2067_v8, %v4198_v19  ;;  %v1689_v56 = vpop.f32.mrb[5].mxu0 }
 0x548   :  { %1790 = vst [vmem:[#allocation9] sm:$0xff] %v1774_v62  ;;  %v1690_v27 = vadd.f32 %v4198_v19, %v1689_v56 }
 0x549   :  { %v1777_v22 = vadd.f32 %v1761_v32, %v1695_v33 }
 0x54a   :  { %v1776_v23 = vadd.f32 %v1760_v59, %v1690_v27  ;;  %v2070_v11 = vpop.f32.mrb[6].mxu0 }
 0x54b   :  { %1793 = vst [vmem:[#allocation9 + $0x18] sm:$0xff] %v1777_v22  ;;  %v1705_v34 = vadd.f32 %v2070_v11, %v4198_v19  ;;  %v1699_v55 = vpop.f32.mrb[7].mxu0 }
 0x54c   :  { %1792 = vst [vmem:[#allocation9 + $0x10] sm:$0xff] %v1776_v23  ;;  %v1700_v41 = vadd.f32 %v4198_v19, %v1699_v55 }
 0x54d   :  { %v1779_v47 = vadd.f32 %v1763_v14, %v1705_v34 }
 0x54e   :  { %v1778_v31 = vadd.f32 %v1762_v46, %v1700_v41  ;;  %v2073_v5 = vpop.f32.mrb[8].mxu0 }
 0x54f   :  { %1795 = vst [vmem:[#allocation9 + $0x28] sm:$0xff] %v1779_v47  ;;  %v1715_v18 = vadd.f32 %v2073_v5, %v4198_v19  ;;  %v1709_v26 = vpop.f32.mrb[9].mxu0 }
 0x550   :  { %1794 = vst [vmem:[#allocation9 + $0x20] sm:$0xff] %v1778_v31  ;;  %v1710_v51 = vadd.f32 %v4198_v19, %v1709_v26 }
 0x551   :  { %v1781_v44 = vadd.f32 %v1765_v0, %v1715_v18 }
 0x552   :  { %v1780_v40 = vadd.f32 %v1764_v42, %v1710_v51  ;;  %v2076_v16 = vpop.f32.mrb[10].mxu0 }
 0x553   :  { %1797 = vst [vmem:[#allocation9 + $0x38] sm:$0xff] %v1781_v44  ;;  %v1725_v35 = vadd.f32 %v2076_v16, %v4198_v19  ;;  %v1719_v6 = vpop.f32.mrb[11].mxu0 }
 0x554   :  { %1796 = vst [vmem:[#allocation9 + $0x30] sm:$0xff] %v1780_v40  ;;  %v1720_v21 = vadd.f32 %v4198_v19, %v1719_v6 }
 0x555   :  { %v1783_v49 = vadd.f32 %v1767_v37, %v1725_v35 }
 0x556   :  { %v1782_v13 = vadd.f32 %v1766_v12, %v1720_v21  ;;  %v2079_v2 = vpop.f32.mrb[12].mxu0 }
 0x557   :  { %1799 = vst [vmem:[#allocation9 + $0x48] sm:$0xff] %v1783_v49  ;;  %v1735_v29 = vadd.f32 %v2079_v2, %v4198_v19  ;;  %v1729_v3 = vpop.f32.mrb[13].mxu0 }
 0x558   :  { %1798 = vst [vmem:[#allocation9 + $0x40] sm:$0xff] %v1782_v13  ;;  %v1730_v52 = vadd.f32 %v4198_v19, %v1729_v3 }
 0x559   :  { %v1785_v61 = vadd.f32 %v1769_v36, %v1735_v29 }
 0x55a   :  { %v1784_v28 = vadd.f32 %v1768_v39, %v1730_v52  ;;  %v2082_v20 = vpop.f32.mrb[14].mxu0 }
 0x55b   :  { %1801 = vst [vmem:[#allocation9 + $0x58] sm:$0xff] %v1785_v61  ;;  %v1745_v58 = vadd.f32 %v2082_v20, %v4198_v19  ;;  %v1739_v38 = vpop.f32.mrb[15].mxu0 }
 0x55c   :  { %1800 = vst [vmem:[#allocation9 + $0x50] sm:$0xff] %v1784_v28  ;;  %v1740_v25 = vadd.f32 %v4198_v19, %v1739_v38 }
 0x55d   :  { %v1787_v50 = vadd.f32 %v1771_v7, %v1745_v58 }
 0x55e   :  { %v1786_v53 = vadd.f32 %v1770_v10, %v1740_v25  ;;  %v2085_v54 = vpop.f32.mrb[16].mxu0 }
 0x55f   :  { %1803 = vst [vmem:[#allocation9 + $0x68] sm:$0xff] %v1787_v50  ;;  %v1755_v57 = vadd.f32 %v2085_v54, %v4198_v19  ;;  %v1749_v63 = vpop.f32.mrb[17].mxu0 }
 0x560   :  { %1802 = vst [vmem:[#allocation9 + $0x60] sm:$0xff] %v1786_v53  ;;  %v1750_v45 = vadd.f32 %v4198_v19, %v1749_v63 }
 0x561   :  { %v1789_v15 = vadd.f32 %v1773_v24, %v1755_v57 }
 0x562   :  { %v1788_v4 = vadd.f32 %v1772_v17, %v1750_v45 }
 0x563   :  { %1805 = vst [vmem:[#allocation9 + $0x78] sm:$0xff] %v1789_v15 }
 0x564   :  { %1804 = vst [vmem:[#allocation9 + $0x70] sm:$0xff] %v1788_v4 }
 0x565   :  { %2317 = shalt.err (!%p2314_p6)
}
 0x566   :  { %s2318_s0 = scalar_lea.hbm %s4283_s4, 2048 }
 0x567   :  { %p2319_p7 = scmp.ne.s32.totalorder %s4283_s4, %s2318_s0  ;;  %p2322_p8 = scmp.lt.u32.totalorder %s2318_s0, %s4283_s4 }
 0x569   :  { %p2324_p9 = pnand %p2322_p8, %p2319_p7 }
 0x56b   :  { %2327 = shalt.err (!%p2324_p9)
}
 0x56c   :  { %1817 = dma.vmem_to_hbm [thread:$0]  %s1812_s8, 2048, %s4283_s4, [#allocation6], %s2338_s1, %s2338_s1, %s2339_s13  }
 0x56d   :  { %2332 = dma.done.wait [#allocation6], 2048  }
 0x56e   :  { %2333 = vsyncadd [#allocation6], 4294965248 }
 0x56f   :  { %1821 = vsyncpa [#allocation5], 1 }
 0x570   :  { %1822 = vsyncpa [#allocation8], 1 }
 0x571   :  { %1823 = vsyncpa [#allocation6], 1 }

</bundles_post_ra>
